<compile_context>
chip_gen: v5e
topology: v5e:2x2
jax: 0.10.0
libtpu: 0.0.40
codegen_flags: <defaults>
</compile_context>

<pallas_src>
import numpy as np

import jax
import jax.numpy as jnp
from jax.experimental import pallas as pl
from jax.experimental.pallas import tpu as pltpu


# ----------------------------------------------------------------------------
# Static geometry helpers (host side)
# ----------------------------------------------------------------------------

def _level_dims(H, W, n_levels):
    """Per-block spatial dims in the flattened, zero-padded, lane-aligned layout."""
    dims = []
    h, w = H, W
    for i in range(n_levels):
        if i > 0:
            h = -(-h // 2)   # ceil: AvgPool2d(kernel=2, stride=2, ceil_mode=True)
            w = -(-w // 2)
        hp, wp = h + 2, w + 2
        m = hp * wp
        mp = -(-m // 128) * 128      # round lanes up to a multiple of 128
        dims.append(dict(H=h, W=w, Hp=hp, Wp=wp, M=m, Mp=mp))
    return dims


def _make_mask(lv):
    """(1, Mp) f32 mask: 1 at valid (interior) spatial positions, 0 at halo/tail lanes."""
    mask = np.zeros((1, lv["Mp"]), np.float32)
    for y in range(lv["H"]):
        for x in range(lv["W"]):
            mask[0, (y + 1) * lv["Wp"] + (x + 1)] = 1.0
    return jnp.asarray(mask)


def _make_pool_matrix(src, dst):
    """Constant (Mp_src, Mp_dst) matrix implementing AvgPool2d(2,2,ceil_mode=True) plus
    re-insertion into the next level's zero-padded flat layout (halo/tail columns stay 0)."""
    P = np.zeros((src["Mp"], dst["Mp"]), np.float32)
    for i in range(dst["H"]):
        for j in range(dst["W"]):
            srcs = []
            for dy in range(2):
                for dx in range(2):
                    sy, sx = 2 * i + dy, 2 * j + dx
                    if sy < src["H"] and sx < src["W"]:
                        srcs.append((sy + 1) * src["Wp"] + (sx + 1))
            dpos = (i + 1) * dst["Wp"] + (j + 1)
            for s in srcs:
                P[s, dpos] = 1.0 / len(srcs)
    return jnp.asarray(P)


def _conv_weight_to_matmul(w):
    """(3, 3, Cin, Cout) -> (Cout, 9*Cin) bf16, tap-major columns (tap = 3*ky + kx)."""
    cout = w.shape[-1]
    return jnp.transpose(w, (3, 0, 1, 2)).reshape(cout, -1).astype(jnp.bfloat16)


# ----------------------------------------------------------------------------
# Fused kernel
# ----------------------------------------------------------------------------

def _conv3x3_im2col(x, wmat_bf16, Wp, Mp):
    # x: (Cin, Mp) f32 flattened zero-padded activation (0 outside the valid interior).
    # wmat_bf16: (Cout, 9*Cin) bf16.  Returns (Cout, Mp) f32; only interior lanes are
    # meaningful -- the caller masks.  Taps are static lane rolls (XLU); roll wrap-around
    # only ever lands in halo/tail lanes, which are masked away afterwards.
    taps = []
    for ky in range(3):
        for kx in range(3):
            d = (ky - 1) * Wp + (kx - 1)          # neighbour offset in the flat layout
            shift = (-d) % Mp
            taps.append(pltpu.roll(x, shift, axis=1) if shift else x)
    patches = jnp.concatenate(taps, axis=0)       # (9*Cin, Mp) im2col matrix, built in VMEM
    return jnp.dot(wmat_bf16, patches.astype(jnp.bfloat16),
                   preferred_element_type=jnp.float32)


def _make_fused_kernel(levels, n_blocks, n_extra, latent_dim):
    def kernel(*refs):
        it = iter(refs)
        x_ref = next(it)
        blocks = []
        for _ in range(n_blocks):
            w0 = next(it); g = next(it); b = next(it)
            extras = [(next(it), next(it)) for _ in range(n_extra)]
            blocks.append((w0, g, b, extras))
        pools = [next(it) for _ in range(n_blocks - 1)]
        masks = [next(it) for _ in range(n_blocks)]
        w_head = next(it); b_head = next(it)
        mu_ref = next(it); sigma_ref = next(it)

        x = x_ref[0]                                        # (Cin, Mp0) f32
        for i in range(n_blocks):
            lv = levels[i]
            Wp, Mp = lv["Wp"], lv["Mp"]
            inv_hw = 1.0 / float(lv["H"] * lv["W"])
            mask = masks[i][...]                            # (1, Mp)

            if i > 0:
                # AvgPool2d(2,2,ceil_mode=True) + re-pad, as one lane-dense MXU matmul.
                x = jnp.dot(x, pools[i - 1][...], preferred_element_type=jnp.float32)

            w0_ref, g_ref, b_ref, extras = blocks[i]

            # Conv2d(3x3, bias=False) -> InstanceNorm2d(affine, eps=1e-5) -> ReLU
            y = _conv3x3_im2col(x, w0_ref[...], Wp, Mp) * mask
            mean = jnp.sum(y, axis=1, keepdims=True) * inv_hw          # per-channel (Cout, 1)
            yc = (y - mean) * mask
            var = jnp.sum(yc * yc, axis=1, keepdims=True) * inv_hw     # biased variance
            y = yc * jax.lax.rsqrt(var + 1e-5)
            y = jnp.maximum(y * g_ref[...] + b_ref[...], 0.0) * mask

            # (no_convs_per_block - 1) x [Conv2d(3x3, bias=True) -> ReLU]
            for we_ref, be_ref in extras:
                y = _conv3x3_im2col(y, we_ref[...], Wp, Mp) + be_ref[...]
                y = jnp.maximum(y, 0.0) * mask
            x = y

        # Head: global mean over (H, W) -> 1x1 conv -> split -> sigma = exp(log_sigma).
        # Mean and 1x1-conv commute; doing the matmul first keeps it lane-dense.
        lv = levels[-1]
        hx = jnp.dot(w_head[...], x, preferred_element_type=jnp.float32)   # (2L, Mp)
        mls = jnp.sum(hx, axis=1, keepdims=True) * (1.0 / float(lv["H"] * lv["W"]))
        mls = mls + b_head[...]                                            # (2L, 1)
        mu_ref[...] = mls[:latent_dim].reshape(1, latent_dim, 1)
        sigma_ref[...] = jnp.exp(mls[latent_dim:]).reshape(1, latent_dim, 1)

    return kernel


# ----------------------------------------------------------------------------
# Parameters (deterministic synthetic init; shapes follow the nn.Module __init__)
# ----------------------------------------------------------------------------

def init_params(key, input_channels, num_filters, no_convs_per_block, latent_dim):
    params = {"blocks": []}
    cin = input_channels
    for cout in num_filters:
        key, k1 = jax.random.split(key)
        std0 = (2.0 / (cin * 9)) ** 0.5              # kaiming_normal fan_in, relu
        block = {
            "w0": std0 * jax.random.normal(k1, (3, 3, cin, cout), jnp.float32),
            "gamma": jnp.ones((cout,), jnp.float32),  # InstanceNorm2d affine init
            "beta": jnp.zeros((cout,), jnp.float32),
            "convs": [],
        }
        for _ in range(no_convs_per_block - 1):
            key, kw, kb = jax.random.split(key, 3)
            stdc = (2.0 / (cout * 9)) ** 0.5
            block["convs"].append({
                "w": stdc * jax.random.normal(kw, (3, 3, cout, cout), jnp.float32),
                "b": 0.01 * jax.random.normal(kb, (cout,), jnp.float32),
            })
        params["blocks"].append(block)
        cin = cout
    key, kw, kb = jax.random.split(key, 3)
    cf = num_filters[-1]
    std_h = (2.0 / cf) ** 0.5
    params["head_w"] = std_h * jax.random.normal(kw, (2 * latent_dim, cf), jnp.float32)
    params["head_b"] = jax.random.normal(kb, (2 * latent_dim,), jnp.float32)
    return params


# ----------------------------------------------------------------------------
# Forward pass = AxisAlignedConvGaussian.forward (single fused pallas_call)
# ----------------------------------------------------------------------------

def axis_aligned_conv_gaussian(params, x_nchw, latent_dim, segm_nchw=None):
    if segm_nchw is not None:
        x_nchw = jnp.concatenate([x_nchw, segm_nchw], axis=1)   # posterior: cat on channel axis
    x = x_nchw.astype(jnp.float32)
    N, C, H, W = x.shape
    blocks = params["blocks"]
    n_blocks = len(blocks)
    n_extra = len(blocks[0]["convs"])
    levels = _level_dims(H, W, n_blocks)

    # One-time input prep: zero-pad spatially by 1, flatten (H+2)*(W+2) onto a single lane
    # axis and round it up to a multiple of 128 so every in-kernel roll/store is lane-aligned.
    lv0 = levels[0]
    xp = jnp.pad(x, ((0, 0), (0, 0), (1, 1), (1, 1))).reshape(N, C, lv0["M"])
    xp = jnp.pad(xp, ((0, 0), (0, 0), (0, lv0["Mp"] - lv0["M"])))

    inputs = [xp]
    in_specs = [pl.BlockSpec((1, C, lv0["Mp"]), lambda n: (n, 0, 0))]

    def add_full(arr):
        inputs.append(arr)
        nd = arr.ndim
        in_specs.append(pl.BlockSpec(arr.shape, lambda n, _nd=nd: (0,) * _nd))

    for blk in blocks:
        cout = blk["w0"].shape[-1]
        add_full(_conv_weight_to_matmul(blk["w0"]))                  # bf16 (Cout, 9*Cin)
        add_full(blk["gamma"].reshape(cout, 1))
        add_full(blk["beta"].reshape(cout, 1))
        for conv in blk["convs"]:
            add_full(_conv_weight_to_matmul(conv["w"]))
            add_full(conv["b"].reshape(cout, 1))
    for i in range(1, n_blocks):
        add_full(_make_pool_matrix(levels[i - 1], levels[i]))
    for lv in levels:
        add_full(_make_mask(lv))
    add_full(params["head_w"])                                       # (2L, Cf) f32
    add_full(params["head_b"].reshape(-1, 1))                        # (2L, 1)

    kernel = _make_fused_kernel(levels, n_blocks, n_extra, latent_dim)
    mu, sigma = pl.pallas_call(
        kernel,
        out_shape=(jax.ShapeDtypeStruct((N, latent_dim, 1), jnp.float32),
                   jax.ShapeDtypeStruct((N, latent_dim, 1), jnp.float32)),
        grid=(N,),
        in_specs=in_specs,
        out_specs=(pl.BlockSpec((1, latent_dim, 1), lambda n: (n, 0, 0)),
                   pl.BlockSpec((1, latent_dim, 1), lambda n: (n, 0, 0))),
        compiler_params=pltpu.CompilerParams(
            dimension_semantics=("parallel",)),      # batch axis: v7x uses both TensorCores
    )(*inputs)
    # TODO(synk): torch returns Independent(Normal(mu, sigma), 1); we return its parameters.
    return mu[:, :, 0], sigma[:, :, 0]


# ----------------------------------------------------------------------------
# Pure-JAX reference (same bf16 matmul operands) for a correctness check
# ----------------------------------------------------------------------------

def _reference_forward(params, x_nchw, latent_dim):
    x = jnp.transpose(x_nchw.astype(jnp.float32), (0, 2, 3, 1))      # NHWC

    def conv(inp, w):
        return jax.lax.conv_general_dilated(
            inp.astype(jnp.bfloat16), w.astype(jnp.bfloat16),
            window_strides=(1, 1), padding="SAME",
            dimension_numbers=("NHWC", "HWIO", "NHWC"),
            preferred_element_type=jnp.float32)

    for i, blk in enumerate(params["blocks"]):
        if i != 0:
            n_, h_, w_, c_ = x.shape                                 # even H, W in this demo
            x = x.reshape(n_, h_ // 2, 2, w_ // 2, 2, c_).mean(axis=(2, 4))
        y = conv(x, blk["w0"])
        mean = jnp.mean(y, axis=(1, 2), keepdims=True)
        var = jnp.mean((y - mean) ** 2, axis=(1, 2), keepdims=True)
        y = (y - mean) * jax.lax.rsqrt(var + 1e-5)
        y = jnp.maximum(y * blk["gamma"] + blk["beta"], 0.0)
        for cv in blk["convs"]:
            y = jnp.maximum(conv(y, cv["w"]) + cv["b"], 0.0)
        x = y
    feat = jnp.mean(x, axis=(1, 2))                                  # (N, Cf)
    mls = feat @ params["head_w"].T + params["head_b"]               # (N, 2L)
    return mls[:, :latent_dim], jnp.exp(mls[:, latent_dim:])


if __name__ == "__main__":
    key = jax.random.PRNGKey(0)
    input_channels = 4
    num_filters = [8, 16]
    no_convs_per_block = 2
    latent_dim = 4
    batch, H, W = 2, 16, 16

    kp, kx = jax.random.split(key)
    params = init_params(kp, input_channels, num_filters, no_convs_per_block, latent_dim)
    x = jax.random.normal(kx, (batch, input_channels, H, W), jnp.float32)  # NCHW like PyTorch

    mu, sigma = axis_aligned_conv_gaussian(params, x, latent_dim)
    mu = jax.block_until_ready(mu)
    sigma = jax.block_until_ready(sigma)

    assert mu.shape == (batch, latent_dim) and sigma.shape == (batch, latent_dim)
    assert bool(jnp.all(jnp.isfinite(mu))) and bool(jnp.all(sigma > 0))

    mu_ref, sigma_ref = _reference_forward(params, x, latent_dim)
    assert bool(jnp.allclose(mu, mu_ref, rtol=2e-2, atol=2e-2)), (mu, mu_ref)
    assert bool(jnp.allclose(sigma, sigma_ref, rtol=3e-2, atol=2e-2)), (sigma, sigma_ref)

    print("KERNEL_OK")
</pallas_src>

<mosaic_0001>
module attributes {stable_mosaic.version = 11 : i64} {
  func.func @kernel(%arg0: i32, %arg1: memref<1x4x384xf32, #tpu.memory_space<vmem>>, %arg2: memref<8x36xbf16, #tpu.memory_space<vmem>>, %arg3: memref<8x1xf32, #tpu.memory_space<vmem>>, %arg4: memref<8x1xf32, #tpu.memory_space<vmem>>, %arg5: memref<8x72xbf16, #tpu.memory_space<vmem>>, %arg6: memref<8x1xf32, #tpu.memory_space<vmem>>, %arg7: memref<16x72xbf16, #tpu.memory_space<vmem>>, %arg8: memref<16x1xf32, #tpu.memory_space<vmem>>, %arg9: memref<16x1xf32, #tpu.memory_space<vmem>>, %arg10: memref<16x144xbf16, #tpu.memory_space<vmem>>, %arg11: memref<16x1xf32, #tpu.memory_space<vmem>>, %arg12: memref<384x128xf32, #tpu.memory_space<vmem>>, %arg13: memref<1x384xf32, #tpu.memory_space<vmem>>, %arg14: memref<1x128xf32, #tpu.memory_space<vmem>>, %arg15: memref<8x16xf32, #tpu.memory_space<vmem>>, %arg16: memref<8x1xf32, #tpu.memory_space<vmem>>, %arg17: memref<1x4x1xf32, #tpu.memory_space<vmem>>, %arg18: memref<1x4x1xf32, #tpu.memory_space<vmem>>) attributes {dimension_semantics = [#tpu.dimension_semantics<parallel>], iteration_bounds = array<i64: 2>, scalar_prefetch = 0 : i64, scratch_operands = 0 : i64, tpu.core_type = #tpu.core_type<tc>, window_params = [{transform_indices = @transform_0, window_bounds = array<i64: 1, 4, 384>}, {pipeline_mode = #tpu.pipeline_mode<synchronous>, transform_indices = @transform_1, window_bounds = array<i64: 8, 36>}, {pipeline_mode = #tpu.pipeline_mode<synchronous>, transform_indices = @transform_2, window_bounds = array<i64: 8, 1>}, {pipeline_mode = #tpu.pipeline_mode<synchronous>, transform_indices = @transform_3, window_bounds = array<i64: 8, 1>}, {pipeline_mode = #tpu.pipeline_mode<synchronous>, transform_indices = @transform_4, window_bounds = array<i64: 8, 72>}, {pipeline_mode = #tpu.pipeline_mode<synchronous>, transform_indices = @transform_5, window_bounds = array<i64: 8, 1>}, {pipeline_mode = #tpu.pipeline_mode<synchronous>, transform_indices = @transform_6, window_bounds = array<i64: 16, 72>}, {pipeline_mode = #tpu.pipeline_mode<synchronous>, transform_indices = @transform_7, window_bounds = array<i64: 16, 1>}, {pipeline_mode = #tpu.pipeline_mode<synchronous>, transform_indices = @transform_8, window_bounds = array<i64: 16, 1>}, {pipeline_mode = #tpu.pipeline_mode<synchronous>, transform_indices = @transform_9, window_bounds = array<i64: 16, 144>}, {pipeline_mode = #tpu.pipeline_mode<synchronous>, transform_indices = @transform_10, window_bounds = array<i64: 16, 1>}, {pipeline_mode = #tpu.pipeline_mode<synchronous>, transform_indices = @transform_11, window_bounds = array<i64: 384, 128>}, {pipeline_mode = #tpu.pipeline_mode<synchronous>, transform_indices = @transform_12, window_bounds = array<i64: 1, 384>}, {pipeline_mode = #tpu.pipeline_mode<synchronous>, transform_indices = @transform_13, window_bounds = array<i64: 1, 128>}, {pipeline_mode = #tpu.pipeline_mode<synchronous>, transform_indices = @transform_14, window_bounds = array<i64: 8, 16>}, {pipeline_mode = #tpu.pipeline_mode<synchronous>, transform_indices = @transform_15, window_bounds = array<i64: 8, 1>}, {transform_indices = @transform_16, window_bounds = array<i64: 1, 4, 1>}, {transform_indices = @transform_17, window_bounds = array<i64: 1, 4, 1>}]} {
    %c0 = arith.constant 0 : index
    %c0_0 = arith.constant 0 : index
    %c0_1 = arith.constant 0 : index
    %0 = vector.load %arg1[%c0, %c0_0, %c0_1] : memref<1x4x384xf32, #tpu.memory_space<vmem>>, vector<1x4x384xf32>
    %1 = vector.shape_cast %0 : vector<1x4x384xf32> to vector<4x384xf32>
    %c0_2 = arith.constant 0 : index
    %c0_3 = arith.constant 0 : index
    %2 = vector.load %arg13[%c0_2, %c0_3] : memref<1x384xf32, #tpu.memory_space<vmem>>, vector<1x384xf32>
    %c0_4 = arith.constant 0 : index
    %c0_5 = arith.constant 0 : index
    %3 = vector.load %arg2[%c0_4, %c0_5] : memref<8x36xbf16, #tpu.memory_space<vmem>>, vector<8x36xbf16>
    %c19_i32 = arith.constant 19 : i32
    %4 = tpu.dynamic_rotate %1 by %c19_i32 dim 1 : vector<4x384xf32>, i32 -> vector<4x384xf32>
    %c18_i32 = arith.constant 18 : i32
    %5 = tpu.dynamic_rotate %1 by %c18_i32 dim 1 : vector<4x384xf32>, i32 -> vector<4x384xf32>
    %c17_i32 = arith.constant 17 : i32
    %6 = tpu.dynamic_rotate %1 by %c17_i32 dim 1 : vector<4x384xf32>, i32 -> vector<4x384xf32>
    %c1_i32 = arith.constant 1 : i32
    %7 = tpu.dynamic_rotate %1 by %c1_i32 dim 1 : vector<4x384xf32>, i32 -> vector<4x384xf32>
    %c383_i32 = arith.constant 383 : i32
    %8 = tpu.dynamic_rotate %1 by %c383_i32 dim 1 : vector<4x384xf32>, i32 -> vector<4x384xf32>
    %c367_i32 = arith.constant 367 : i32
    %9 = tpu.dynamic_rotate %1 by %c367_i32 dim 1 : vector<4x384xf32>, i32 -> vector<4x384xf32>
    %c366_i32 = arith.constant 366 : i32
    %10 = tpu.dynamic_rotate %1 by %c366_i32 dim 1 : vector<4x384xf32>, i32 -> vector<4x384xf32>
    %c365_i32 = arith.constant 365 : i32
    %11 = tpu.dynamic_rotate %1 by %c365_i32 dim 1 : vector<4x384xf32>, i32 -> vector<4x384xf32>
    %12 = tpu.concatenate %4, %5, %6, %7, %1, %8, %9, %10, %11 in 0 : vector<4x384xf32>, vector<4x384xf32>, vector<4x384xf32>, vector<4x384xf32>, vector<4x384xf32>, vector<4x384xf32>, vector<4x384xf32>, vector<4x384xf32>, vector<4x384xf32> -> vector<36x384xf32>
    %13 = arith.truncf %12 : vector<36x384xf32> to vector<36x384xbf16>
    %cst = arith.constant dense<0.000000e+00> : vector<8x384xf32>
    %14 = tpu.matmul %3, %13, %cst {dimension_numbers = #tpu.dot_dimension_numbers<[1], [0], [0], [1], [0, 0, 1, 1], [], []>} : vector<8x36xbf16>, vector<36x384xbf16>, vector<8x384xf32> -> vector<8x384xf32>
    %15 = vector.broadcast %2 : vector<1x384xf32> to vector<8x384xf32>
    %16 = arith.mulf %14, %15 : vector<8x384xf32>
    %cst_6 = arith.constant dense<0.000000e+00> : vector<8xf32>
    %17 = vector.multi_reduction <add>, %16, %cst_6 [1] : vector<8x384xf32> to vector<8xf32>
    %18 = vector.shape_cast %17 : vector<8xf32> to vector<8x1xf32>
    %cst_7 = arith.constant 3.906250e-03 : f32
    %19 = vector.broadcast %cst_7 : f32 to vector<8x1xf32>
    %20 = arith.mulf %18, %19 : vector<8x1xf32>
    %21 = vector.broadcast %20 : vector<8x1xf32> to vector<8x384xf32>
    %22 = arith.subf %16, %21 : vector<8x384xf32>
    %23 = vector.broadcast %2 : vector<1x384xf32> to vector<8x384xf32>
    %24 = arith.mulf %22, %23 : vector<8x384xf32>
    %25 = arith.mulf %24, %24 : vector<8x384xf32>
    %cst_8 = arith.constant dense<0.000000e+00> : vector<8xf32>
    %26 = vector.multi_reduction <add>, %25, %cst_8 [1] : vector<8x384xf32> to vector<8xf32>
    %27 = vector.shape_cast %26 : vector<8xf32> to vector<8x1xf32>
    %cst_9 = arith.constant 3.906250e-03 : f32
    %28 = vector.broadcast %cst_9 : f32 to vector<8x1xf32>
    %29 = arith.mulf %27, %28 : vector<8x1xf32>
    %cst_10 = arith.constant 9.99999974E-6 : f32
    %30 = vector.broadcast %cst_10 : f32 to vector<8x1xf32>
    %31 = arith.addf %29, %30 : vector<8x1xf32>
    %32 = math.rsqrt %31 : vector<8x1xf32>
    %33 = vector.broadcast %32 : vector<8x1xf32> to vector<8x384xf32>
    %34 = arith.mulf %24, %33 : vector<8x384xf32>
    %c0_11 = arith.constant 0 : index
    %c0_12 = arith.constant 0 : index
    %35 = vector.load %arg3[%c0_11, %c0_12] : memref<8x1xf32, #tpu.memory_space<vmem>>, vector<8x1xf32>
    %36 = vector.broadcast %35 : vector<8x1xf32> to vector<8x384xf32>
    %37 = arith.mulf %34, %36 : vector<8x384xf32>
    %c0_13 = arith.constant 0 : index
    %c0_14 = arith.constant 0 : index
    %38 = vector.load %arg4[%c0_13, %c0_14] : memref<8x1xf32, #tpu.memory_space<vmem>>, vector<8x1xf32>
    %39 = vector.broadcast %38 : vector<8x1xf32> to vector<8x384xf32>
    %40 = arith.addf %37, %39 : vector<8x384xf32>
    %cst_15 = arith.constant 0.000000e+00 : f32
    %41 = vector.broadcast %cst_15 : f32 to vector<8x384xf32>
    %42 = arith.maximumf %40, %41 : vector<8x384xf32>
    %43 = vector.broadcast %2 : vector<1x384xf32> to vector<8x384xf32>
    %44 = arith.mulf %42, %43 : vector<8x384xf32>
    %c0_16 = arith.constant 0 : index
    %c0_17 = arith.constant 0 : index
    %45 = vector.load %arg5[%c0_16, %c0_17] : memref<8x72xbf16, #tpu.memory_space<vmem>>, vector<8x72xbf16>
    %c19_i32_18 = arith.constant 19 : i32
    %46 = tpu.dynamic_rotate %44 by %c19_i32_18 dim 1 : vector<8x384xf32>, i32 -> vector<8x384xf32>
    %c18_i32_19 = arith.constant 18 : i32
    %47 = tpu.dynamic_rotate %44 by %c18_i32_19 dim 1 : vector<8x384xf32>, i32 -> vector<8x384xf32>
    %c17_i32_20 = arith.constant 17 : i32
    %48 = tpu.dynamic_rotate %44 by %c17_i32_20 dim 1 : vector<8x384xf32>, i32 -> vector<8x384xf32>
    %c1_i32_21 = arith.constant 1 : i32
    %49 = tpu.dynamic_rotate %44 by %c1_i32_21 dim 1 : vector<8x384xf32>, i32 -> vector<8x384xf32>
    %c383_i32_22 = arith.constant 383 : i32
    %50 = tpu.dynamic_rotate %44 by %c383_i32_22 dim 1 : vector<8x384xf32>, i32 -> vector<8x384xf32>
    %c367_i32_23 = arith.constant 367 : i32
    %51 = tpu.dynamic_rotate %44 by %c367_i32_23 dim 1 : vector<8x384xf32>, i32 -> vector<8x384xf32>
    %c366_i32_24 = arith.constant 366 : i32
    %52 = tpu.dynamic_rotate %44 by %c366_i32_24 dim 1 : vector<8x384xf32>, i32 -> vector<8x384xf32>
    %c365_i32_25 = arith.constant 365 : i32
    %53 = tpu.dynamic_rotate %44 by %c365_i32_25 dim 1 : vector<8x384xf32>, i32 -> vector<8x384xf32>
    %54 = tpu.concatenate %46, %47, %48, %49, %44, %50, %51, %52, %53 in 0 : vector<8x384xf32>, vector<8x384xf32>, vector<8x384xf32>, vector<8x384xf32>, vector<8x384xf32>, vector<8x384xf32>, vector<8x384xf32>, vector<8x384xf32>, vector<8x384xf32> -> vector<72x384xf32>
    %55 = arith.truncf %54 : vector<72x384xf32> to vector<72x384xbf16>
    %cst_26 = arith.constant dense<0.000000e+00> : vector<8x384xf32>
    %56 = tpu.matmul %45, %55, %cst_26 {dimension_numbers = #tpu.dot_dimension_numbers<[1], [0], [0], [1], [0, 0, 1, 1], [], []>} : vector<8x72xbf16>, vector<72x384xbf16>, vector<8x384xf32> -> vector<8x384xf32>
    %c0_27 = arith.constant 0 : index
    %c0_28 = arith.constant 0 : index
    %57 = vector.load %arg6[%c0_27, %c0_28] : memref<8x1xf32, #tpu.memory_space<vmem>>, vector<8x1xf32>
    %58 = vector.broadcast %57 : vector<8x1xf32> to vector<8x384xf32>
    %59 = arith.addf %56, %58 : vector<8x384xf32>
    %cst_29 = arith.constant 0.000000e+00 : f32
    %60 = vector.broadcast %cst_29 : f32 to vector<8x384xf32>
    %61 = arith.maximumf %59, %60 : vector<8x384xf32>
    %62 = vector.broadcast %2 : vector<1x384xf32> to vector<8x384xf32>
    %63 = arith.mulf %61, %62 : vector<8x384xf32>
    %c0_30 = arith.constant 0 : index
    %c0_31 = arith.constant 0 : index
    %64 = vector.load %arg14[%c0_30, %c0_31] : memref<1x128xf32, #tpu.memory_space<vmem>>, vector<1x128xf32>
    %c0_32 = arith.constant 0 : index
    %c0_33 = arith.constant 0 : index
    %65 = vector.load %arg12[%c0_32, %c0_33] : memref<384x128xf32, #tpu.memory_space<vmem>>, vector<384x128xf32>
    %cst_34 = arith.constant dense<0.000000e+00> : vector<8x128xf32>
    %66 = tpu.matmul %63, %65, %cst_34 {dimension_numbers = #tpu.dot_dimension_numbers<[1], [0], [0], [1], [0, 0, 1, 1], [], []>} : vector<8x384xf32>, vector<384x128xf32>, vector<8x128xf32> -> vector<8x128xf32>
    %c0_35 = arith.constant 0 : index
    %c0_36 = arith.constant 0 : index
    %67 = vector.load %arg7[%c0_35, %c0_36] : memref<16x72xbf16, #tpu.memory_space<vmem>>, vector<16x72xbf16>
    %c11_i32 = arith.constant 11 : i32
    %68 = tpu.dynamic_rotate %66 by %c11_i32 dim 1 : vector<8x128xf32>, i32 -> vector<8x128xf32>
    %c10_i32 = arith.constant 10 : i32
    %69 = tpu.dynamic_rotate %66 by %c10_i32 dim 1 : vector<8x128xf32>, i32 -> vector<8x128xf32>
    %c9_i32 = arith.constant 9 : i32
    %70 = tpu.dynamic_rotate %66 by %c9_i32 dim 1 : vector<8x128xf32>, i32 -> vector<8x128xf32>
    %c1_i32_37 = arith.constant 1 : i32
    %71 = tpu.dynamic_rotate %66 by %c1_i32_37 dim 1 : vector<8x128xf32>, i32 -> vector<8x128xf32>
    %c127_i32 = arith.constant 127 : i32
    %72 = tpu.dynamic_rotate %66 by %c127_i32 dim 1 : vector<8x128xf32>, i32 -> vector<8x128xf32>
    %c119_i32 = arith.constant 119 : i32
    %73 = tpu.dynamic_rotate %66 by %c119_i32 dim 1 : vector<8x128xf32>, i32 -> vector<8x128xf32>
    %c118_i32 = arith.constant 118 : i32
    %74 = tpu.dynamic_rotate %66 by %c118_i32 dim 1 : vector<8x128xf32>, i32 -> vector<8x128xf32>
    %c117_i32 = arith.constant 117 : i32
    %75 = tpu.dynamic_rotate %66 by %c117_i32 dim 1 : vector<8x128xf32>, i32 -> vector<8x128xf32>
    %76 = tpu.concatenate %68, %69, %70, %71, %66, %72, %73, %74, %75 in 0 : vector<8x128xf32>, vector<8x128xf32>, vector<8x128xf32>, vector<8x128xf32>, vector<8x128xf32>, vector<8x128xf32>, vector<8x128xf32>, vector<8x128xf32>, vector<8x128xf32> -> vector<72x128xf32>
    %77 = arith.truncf %76 : vector<72x128xf32> to vector<72x128xbf16>
    %cst_38 = arith.constant dense<0.000000e+00> : vector<16x128xf32>
    %78 = tpu.matmul %67, %77, %cst_38 {dimension_numbers = #tpu.dot_dimension_numbers<[1], [0], [0], [1], [0, 0, 1, 1], [], []>} : vector<16x72xbf16>, vector<72x128xbf16>, vector<16x128xf32> -> vector<16x128xf32>
    %79 = vector.broadcast %64 : vector<1x128xf32> to vector<16x128xf32>
    %80 = arith.mulf %78, %79 : vector<16x128xf32>
    %cst_39 = arith.constant dense<0.000000e+00> : vector<16xf32>
    %81 = vector.multi_reduction <add>, %80, %cst_39 [1] : vector<16x128xf32> to vector<16xf32>
    %82 = vector.shape_cast %81 : vector<16xf32> to vector<16x1xf32>
    %cst_40 = arith.constant 1.562500e-02 : f32
    %83 = vector.broadcast %cst_40 : f32 to vector<16x1xf32>
    %84 = arith.mulf %82, %83 : vector<16x1xf32>
    %85 = vector.broadcast %84 : vector<16x1xf32> to vector<16x128xf32>
    %86 = arith.subf %80, %85 : vector<16x128xf32>
    %87 = vector.broadcast %64 : vector<1x128xf32> to vector<16x128xf32>
    %88 = arith.mulf %86, %87 : vector<16x128xf32>
    %89 = arith.mulf %88, %88 : vector<16x128xf32>
    %cst_41 = arith.constant dense<0.000000e+00> : vector<16xf32>
    %90 = vector.multi_reduction <add>, %89, %cst_41 [1] : vector<16x128xf32> to vector<16xf32>
    %91 = vector.shape_cast %90 : vector<16xf32> to vector<16x1xf32>
    %cst_42 = arith.constant 1.562500e-02 : f32
    %92 = vector.broadcast %cst_42 : f32 to vector<16x1xf32>
    %93 = arith.mulf %91, %92 : vector<16x1xf32>
    %cst_43 = arith.constant 9.99999974E-6 : f32
    %94 = vector.broadcast %cst_43 : f32 to vector<16x1xf32>
    %95 = arith.addf %93, %94 : vector<16x1xf32>
    %96 = math.rsqrt %95 : vector<16x1xf32>
    %97 = vector.broadcast %96 : vector<16x1xf32> to vector<16x128xf32>
    %98 = arith.mulf %88, %97 : vector<16x128xf32>
    %c0_44 = arith.constant 0 : index
    %c0_45 = arith.constant 0 : index
    %99 = vector.load %arg8[%c0_44, %c0_45] : memref<16x1xf32, #tpu.memory_space<vmem>>, vector<16x1xf32>
    %100 = vector.broadcast %99 : vector<16x1xf32> to vector<16x128xf32>
    %101 = arith.mulf %98, %100 : vector<16x128xf32>
    %c0_46 = arith.constant 0 : index
    %c0_47 = arith.constant 0 : index
    %102 = vector.load %arg9[%c0_46, %c0_47] : memref<16x1xf32, #tpu.memory_space<vmem>>, vector<16x1xf32>
    %103 = vector.broadcast %102 : vector<16x1xf32> to vector<16x128xf32>
    %104 = arith.addf %101, %103 : vector<16x128xf32>
    %cst_48 = arith.constant 0.000000e+00 : f32
    %105 = vector.broadcast %cst_48 : f32 to vector<16x128xf32>
    %106 = arith.maximumf %104, %105 : vector<16x128xf32>
    %107 = vector.broadcast %64 : vector<1x128xf32> to vector<16x128xf32>
    %108 = arith.mulf %106, %107 : vector<16x128xf32>
    %c0_49 = arith.constant 0 : index
    %c0_50 = arith.constant 0 : index
    %109 = vector.load %arg10[%c0_49, %c0_50] : memref<16x144xbf16, #tpu.memory_space<vmem>>, vector<16x144xbf16>
    %c11_i32_51 = arith.constant 11 : i32
    %110 = tpu.dynamic_rotate %108 by %c11_i32_51 dim 1 : vector<16x128xf32>, i32 -> vector<16x128xf32>
    %c10_i32_52 = arith.constant 10 : i32
    %111 = tpu.dynamic_rotate %108 by %c10_i32_52 dim 1 : vector<16x128xf32>, i32 -> vector<16x128xf32>
    %c9_i32_53 = arith.constant 9 : i32
    %112 = tpu.dynamic_rotate %108 by %c9_i32_53 dim 1 : vector<16x128xf32>, i32 -> vector<16x128xf32>
    %c1_i32_54 = arith.constant 1 : i32
    %113 = tpu.dynamic_rotate %108 by %c1_i32_54 dim 1 : vector<16x128xf32>, i32 -> vector<16x128xf32>
    %c127_i32_55 = arith.constant 127 : i32
    %114 = tpu.dynamic_rotate %108 by %c127_i32_55 dim 1 : vector<16x128xf32>, i32 -> vector<16x128xf32>
    %c119_i32_56 = arith.constant 119 : i32
    %115 = tpu.dynamic_rotate %108 by %c119_i32_56 dim 1 : vector<16x128xf32>, i32 -> vector<16x128xf32>
    %c118_i32_57 = arith.constant 118 : i32
    %116 = tpu.dynamic_rotate %108 by %c118_i32_57 dim 1 : vector<16x128xf32>, i32 -> vector<16x128xf32>
    %c117_i32_58 = arith.constant 117 : i32
    %117 = tpu.dynamic_rotate %108 by %c117_i32_58 dim 1 : vector<16x128xf32>, i32 -> vector<16x128xf32>
    %118 = tpu.concatenate %110, %111, %112, %113, %108, %114, %115, %116, %117 in 0 : vector<16x128xf32>, vector<16x128xf32>, vector<16x128xf32>, vector<16x128xf32>, vector<16x128xf32>, vector<16x128xf32>, vector<16x128xf32>, vector<16x128xf32>, vector<16x128xf32> -> vector<144x128xf32>
    %119 = arith.truncf %118 : vector<144x128xf32> to vector<144x128xbf16>
    %cst_59 = arith.constant dense<0.000000e+00> : vector<16x128xf32>
    %120 = tpu.matmul %109, %119, %cst_59 {dimension_numbers = #tpu.dot_dimension_numbers<[1], [0], [0], [1], [0, 0, 1, 1], [], []>} : vector<16x144xbf16>, vector<144x128xbf16>, vector<16x128xf32> -> vector<16x128xf32>
    %c0_60 = arith.constant 0 : index
    %c0_61 = arith.constant 0 : index
    %121 = vector.load %arg11[%c0_60, %c0_61] : memref<16x1xf32, #tpu.memory_space<vmem>>, vector<16x1xf32>
    %122 = vector.broadcast %121 : vector<16x1xf32> to vector<16x128xf32>
    %123 = arith.addf %120, %122 : vector<16x128xf32>
    %cst_62 = arith.constant 0.000000e+00 : f32
    %124 = vector.broadcast %cst_62 : f32 to vector<16x128xf32>
    %125 = arith.maximumf %123, %124 : vector<16x128xf32>
    %126 = vector.broadcast %64 : vector<1x128xf32> to vector<16x128xf32>
    %127 = arith.mulf %125, %126 : vector<16x128xf32>
    %c0_63 = arith.constant 0 : index
    %c0_64 = arith.constant 0 : index
    %128 = vector.load %arg15[%c0_63, %c0_64] : memref<8x16xf32, #tpu.memory_space<vmem>>, vector<8x16xf32>
    %cst_65 = arith.constant dense<0.000000e+00> : vector<8x128xf32>
    %129 = tpu.matmul %128, %127, %cst_65 {dimension_numbers = #tpu.dot_dimension_numbers<[1], [0], [0], [1], [0, 0, 1, 1], [], []>} : vector<8x16xf32>, vector<16x128xf32>, vector<8x128xf32> -> vector<8x128xf32>
    %cst_66 = arith.constant dense<0.000000e+00> : vector<8xf32>
    %130 = vector.multi_reduction <add>, %129, %cst_66 [1] : vector<8x128xf32> to vector<8xf32>
    %131 = vector.shape_cast %130 : vector<8xf32> to vector<8x1xf32>
    %cst_67 = arith.constant 1.562500e-02 : f32
    %132 = vector.broadcast %cst_67 : f32 to vector<8x1xf32>
    %133 = arith.mulf %131, %132 : vector<8x1xf32>
    %c0_68 = arith.constant 0 : index
    %c0_69 = arith.constant 0 : index
    %134 = vector.load %arg16[%c0_68, %c0_69] : memref<8x1xf32, #tpu.memory_space<vmem>>, vector<8x1xf32>
    %135 = arith.addf %133, %134 : vector<8x1xf32>
    %136 = vector.extract_strided_slice %135 {offsets = [0, 0], sizes = [4, 1], strides = [1, 1]} : vector<8x1xf32> to vector<4x1xf32>
    %137 = vector.shape_cast %136 : vector<4x1xf32> to vector<1x4x1xf32>
    %c0_70 = arith.constant 0 : index
    %c0_71 = arith.constant 0 : index
    %c0_72 = arith.constant 0 : index
    %138 = vector.load %arg17[%c0_70, %c0_71, %c0_72] : memref<1x4x1xf32, #tpu.memory_space<vmem>>, vector<1x4x1xf32>
    tpu.vector_store %arg17[%c0_70, %c0_71, %c0_72], %137 {strides = array<i32>} : memref<1x4x1xf32, #tpu.memory_space<vmem>>, vector<1x4x1xf32>,
    %139 = vector.extract_strided_slice %135 {offsets = [4, 0], sizes = [4, 1], strides = [1, 1]} : vector<8x1xf32> to vector<4x1xf32>
    %140 = math.exp %139 : vector<4x1xf32>
    %141 = vector.shape_cast %140 : vector<4x1xf32> to vector<1x4x1xf32>
    %c0_73 = arith.constant 0 : index
    %c0_74 = arith.constant 0 : index
    %c0_75 = arith.constant 0 : index
    %142 = vector.load %arg18[%c0_73, %c0_74, %c0_75] : memref<1x4x1xf32, #tpu.memory_space<vmem>>, vector<1x4x1xf32>
    tpu.vector_store %arg18[%c0_73, %c0_74, %c0_75], %141 {strides = array<i32>} : memref<1x4x1xf32, #tpu.memory_space<vmem>>, vector<1x4x1xf32>,
    return
  }
  func.func @transform_0(%arg0: i32) -> (i32, i32, i32) {
    %c0_i32 = arith.constant 0 : i32
    %c0_i32_0 = arith.constant 0 : i32
    %c0_i32_1 = arith.constant 0 : i32
    return %arg0, %c0_i32, %c0_i32_0 : i32, i32, i32
  }
  func.func @transform_1(%arg0: i32) -> (i32, i32) {
    %c0_i32 = arith.constant 0 : i32
    %c0_i32_0 = arith.constant 0 : i32
    %c0_i32_1 = arith.constant 0 : i32
    return %c0_i32, %c0_i32_0 : i32, i32
  }
  func.func @transform_2(%arg0: i32) -> (i32, i32) {
    %c0_i32 = arith.constant 0 : i32
    %c0_i32_0 = arith.constant 0 : i32
    %c0_i32_1 = arith.constant 0 : i32
    return %c0_i32, %c0_i32_0 : i32, i32
  }
  func.func @transform_3(%arg0: i32) -> (i32, i32) {
    %c0_i32 = arith.constant 0 : i32
    %c0_i32_0 = arith.constant 0 : i32
    %c0_i32_1 = arith.constant 0 : i32
    return %c0_i32, %c0_i32_0 : i32, i32
  }
  func.func @transform_4(%arg0: i32) -> (i32, i32) {
    %c0_i32 = arith.constant 0 : i32
    %c0_i32_0 = arith.constant 0 : i32
    %c0_i32_1 = arith.constant 0 : i32
    return %c0_i32, %c0_i32_0 : i32, i32
  }
  func.func @transform_5(%arg0: i32) -> (i32, i32) {
    %c0_i32 = arith.constant 0 : i32
    %c0_i32_0 = arith.constant 0 : i32
    %c0_i32_1 = arith.constant 0 : i32
    return %c0_i32, %c0_i32_0 : i32, i32
  }
  func.func @transform_6(%arg0: i32) -> (i32, i32) {
    %c0_i32 = arith.constant 0 : i32
    %c0_i32_0 = arith.constant 0 : i32
    %c0_i32_1 = arith.constant 0 : i32
    return %c0_i32, %c0_i32_0 : i32, i32
  }
  func.func @transform_7(%arg0: i32) -> (i32, i32) {
    %c0_i32 = arith.constant 0 : i32
    %c0_i32_0 = arith.constant 0 : i32
    %c0_i32_1 = arith.constant 0 : i32
    return %c0_i32, %c0_i32_0 : i32, i32
  }
  func.func @transform_8(%arg0: i32) -> (i32, i32) {
    %c0_i32 = arith.constant 0 : i32
    %c0_i32_0 = arith.constant 0 : i32
    %c0_i32_1 = arith.constant 0 : i32
    return %c0_i32, %c0_i32_0 : i32, i32
  }
  func.func @transform_9(%arg0: i32) -> (i32, i32) {
    %c0_i32 = arith.constant 0 : i32
    %c0_i32_0 = arith.constant 0 : i32
    %c0_i32_1 = arith.constant 0 : i32
    return %c0_i32, %c0_i32_0 : i32, i32
  }
  func.func @transform_10(%arg0: i32) -> (i32, i32) {
    %c0_i32 = arith.constant 0 : i32
    %c0_i32_0 = arith.constant 0 : i32
    %c0_i32_1 = arith.constant 0 : i32
    return %c0_i32, %c0_i32_0 : i32, i32
  }
  func.func @transform_11(%arg0: i32) -> (i32, i32) {
    %c0_i32 = arith.constant 0 : i32
    %c0_i32_0 = arith.constant 0 : i32
    %c0_i32_1 = arith.constant 0 : i32
    return %c0_i32, %c0_i32_0 : i32, i32
  }
  func.func @transform_12(%arg0: i32) -> (i32, i32) {
    %c0_i32 = arith.constant 0 : i32
    %c0_i32_0 = arith.constant 0 : i32
    %c0_i32_1 = arith.constant 0 : i32
    return %c0_i32, %c0_i32_0 : i32, i32
  }
  func.func @transform_13(%arg0: i32) -> (i32, i32) {
    %c0_i32 = arith.constant 0 : i32
    %c0_i32_0 = arith.constant 0 : i32
    %c0_i32_1 = arith.constant 0 : i32
    return %c0_i32, %c0_i32_0 : i32, i32
  }
  func.func @transform_14(%arg0: i32) -> (i32, i32) {
    %c0_i32 = arith.constant 0 : i32
    %c0_i32_0 = arith.constant 0 : i32
    %c0_i32_1 = arith.constant 0 : i32
    return %c0_i32, %c0_i32_0 : i32, i32
  }
  func.func @transform_15(%arg0: i32) -> (i32, i32) {
    %c0_i32 = arith.constant 0 : i32
    %c0_i32_0 = arith.constant 0 : i32
    %c0_i32_1 = arith.constant 0 : i32
    return %c0_i32, %c0_i32_0 : i32, i32
  }
  func.func @transform_16(%arg0: i32) -> (i32, i32, i32) {
    %c0_i32 = arith.constant 0 : i32
    %c0_i32_0 = arith.constant 0 : i32
    %c0_i32_1 = arith.constant 0 : i32
    return %arg0, %c0_i32, %c0_i32_0 : i32, i32, i32
  }
  func.func @transform_17(%arg0: i32) -> (i32, i32, i32) {
    %c0_i32 = arith.constant 0 : i32
    %c0_i32_0 = arith.constant 0 : i32
    %c0_i32_1 = arith.constant 0 : i32
    return %arg0, %c0_i32, %c0_i32_0 : i32, i32, i32
  }
}

</mosaic_0001>

<bundles_post_ra>
// kernel: tpu_custom_call.1
= control target key start
LH: loop header
LB: loop body
LE: loop exit
PB: predicated region body
PF: predicated region fallthrough
CT: control target
= control target key end

     0   :  { %s2335_s0 = inlined_call_operand.vmem [shape: f32[2,4,384], index: 0, kind: input, shape index: {}]   ;;  %s2336_s1 = inlined_call_operand.vmem [shape: bf16[8,36], index: 1, kind: input, shape index: {}]   ;;  %s2337_s2 = inlined_call_operand.vmem [shape: f32[8,1], index: 2, kind: input, shape index: {}]   ;;  %s2338_s3 = inlined_call_operand.vmem [shape: f32[8,1], index: 3, kind: input, shape index: {}]   ;;  %s2339_s4 = inlined_call_operand.vmem [shape: bf16[8,72], index: 4, kind: input, shape index: {}]   ;;  %s2340_s5 = inlined_call_operand.vmem [shape: f32[8,1], index: 5, kind: input, shape index: {}]   ;;  %s2341_s6 = inlined_call_operand.vmem [shape: bf16[16,72], index: 6, kind: input, shape index: {}]   ;;  %s2342_s7 = inlined_call_operand.vmem [shape: f32[16,1], index: 7, kind: input, shape index: {}]   ;;  %s2343_s8 = inlined_call_operand.vmem [shape: f32[16,1], index: 8, kind: input, shape index: {}]   ;;  %s2344_s9 = inlined_call_operand.vmem [shape: bf16[16,144], index: 9, kind: input, shape index: {}]   ;;  %s2345_s10 = inlined_call_operand.vmem [shape: f32[16,1], index: 10, kind: input, shape index: {}]   ;;  %s2346_s11 = inlined_call_operand.hbm [shape: f32[384,128], index: 11, kind: input, shape index: {}]   ;;  %s2347_s12 = inlined_call_operand.vmem [shape: f32[1,384], index: 12, kind: input, shape index: {}]   ;;  %s2348_s13 = inlined_call_operand.vmem [shape: f32[1,128], index: 13, kind: input, shape index: {}]   ;;  %s2349_s14 = inlined_call_operand.vmem [shape: f32[8,16], index: 14, kind: input, shape index: {}]   ;;  %s2350_s15 = inlined_call_operand.vmem [shape: f32[8,1], index: 15, kind: input, shape index: {}]   ;;  %s2351_s16 = inlined_call_operand.vmem [shape: f32[2,4,1], index: 16, kind: output, shape index: {0}]   ;;  %s2352_s17 = inlined_call_operand.vmem [shape: f32[2,4,1], index: 17, kind: output, shape index: {1}]  }
   0x1   :  { %2354 = sst [smem:[#allocation5_spill]] %s2335_s0 }
   0x2   :  { %2355 = sst [smem:[#allocation6_spill]] %s2336_s1 }
   0x3   :  { %23 = vsyncpa [#allocation3], 0  ;;  %s1897_s24 = smov 0  }
   0x4 LB: > { %s468_s27 = sshll.u32 %s2346_s11, 4  ;;  %s1542_s28 = sadd.s32 4294967295, %s1787_s24   ;;  %s1787_s24 = sphi %s1897_s24, %s29_s24   ;;  %s469_s27 = int_to_ptr.hbm [resolvable:$true] %s468_s27 }
   0x5   : > { %p1544_p0 = scmp.ge.s32.totalorder %s1787_s24, 1  ;;  %p427_p1 = scmp.lt.s32.totalorder %s1787_s24, 3 }
   0x6   : > { %p1587_p2 = scmp.eq.s32.totalorder %s1542_s28, 0  ;;  %s1789_s29 = smov [#allocation2]  }
   0x7   : > { %p428_p3 = pnand %p1544_p0, %p427_p1  ;;  %s470_s0 = sshll.u32 %s1789_s29, 4  ;;  %s471_s0 = int_to_ptr.vmem [resolvable:$true] %s470_s0 }
   0x8   : > { %s1790_s30 = smov 128   ;;  %s1791_s18 = smov 8  }
   0x9   : > { %p1583_p4 = pneg %p428_p3  ;;  %506 = sbr.rel (%p428_p3) target bundleno = 2196 (0x894), region = 84 }
   0xb   : > { %p1584_p5 = pnand %p1587_p2, %p1583_p4 }
   0xd   : > { %1586 = dma.hbm_to_vmem [thread:$0]  (!%p1584_p5), %s469_s27, 6144, %s471_s0, [#allocation3], %s1790_s30, %s1790_s30, %s1791_s18  }
   0xe   : > { %1782 = dma.done.wait (%p1587_p2), [#allocation3], 6144  }
   0xf   : > { %1784 = vsyncadd (%p1587_p2), [#allocation3], 4294961152  ;;  %p562_p6 = scmp.lt.s32.totalorder %s1542_s28, 1  ;;  %s2356_s21 = sld [smem:[#allocation5_spill]]  ;;  %v597_v38 = vlaneseq  ;;  %vm807_vm6 = vcmask 1041408   ;;  %vm781_vm7 = vcmask 1043456  }
  0x10   : > { %s1792_s23 = smov 19   ;;  %s1793_s25 = smov 18   ;;  %vm803_vm10 = vcmask 293888   ;;  %vm1017_vm14 = vcmask 588800  }
  0x11   : > { %s2360_s28 = smov (!%p562_p6, %s1542_s28), 1  ;;  %s1794_s26 = smov 1   ;;  %v1945_v42 = vand.u32 127, %v597_v38 }
  0x12   : > { %s1578_s19 = smul.u32 12, %s2360_s28  ;;  %s1795_s27 = smov 127  }
  0x13   : > { %s1796_s29 = smov 111   ;;  %s1797_s0 = smov 110   ;;  %vm675_vm0 = vcmp.lt.s32.totalorder %v1945_v42, 127  ;;  %vm713_vm1 = vcmp.lt.s32.totalorder %v1945_v42, 110  ;;  %vm618_vm2 = vcmp.lt.s32.totalorder %v1945_v42, 18  ;;  %vm656_vm3 = vcmp.lt.s32.totalorder %v1945_v42, 1 }
  0x14   : > { %s1798_s30 = smov 109   ;;  %s1799_s18 = smov 17   ;;  %vm732_vm4 = vcmp.lt.s32.totalorder %v1945_v42, 109  ;;  %vm694_vm5 = vcmp.lt.s32.totalorder %v1945_v42, 111  ;;  %vm637_vm8 = vcmp.lt.s32.totalorder %v1945_v42, 17  ;;  %vm599_vm9 = vcmp.lt.s32.totalorder %v1945_v42, 19 }
  0x15   : > { %s566_s22 = scalar_lea.vmem %s2356_s21, %s1578_s19  ;;  %s2357_s20 = sld [smem:[#allocation6_spill]]  ;;  %v1118_v42 = vld [vmem:[#allocation2 + $0x150] sm:$0xff] }
  0x16   : > { %v576_v0 = vld [vmem:[%s566_s22] sm:$0xff]  ;;  %v577_v1 = vld [vmem:[%s566_s22 + $0x8] sm:$0xf]  ;;  %s1803_s22 = smov 117   ;;  %s1804_s19 = smov 9  }
  0x17   : > { %582 = vst [vmem:[#allocation1] ss:$2 sm:$0xff] %v576_v0  ;;  %s1805_s1 = smov 10  }
  0x18   : > { %584 = vst [vmem:[#allocation1 + $0x10] ss:$2 sm:$0xff] %v577_v1 }
  0x1e   : > { %v585_v2 = vld.sshfl [vmem:[#allocation1] sm:$0xff pattern:$0x75316420]  ;;  %v1914_v3 = vld.sshfl [vmem:[#allocation1 + $0x8] sm:$0xff pattern:$0x75316420] }
  0x1f   : > { %v587_v4 = vld.sshfl [vmem:[#allocation1 + $0x10] sm:$0xff pattern:$0x75316420]  ;;  %603 = vst [vmem:[#allocation1] ss:$2 sm:$0xff] %v576_v0 }
  0x20   : > { %605 = vst [vmem:[#allocation1 + $0x10] ss:$2 sm:$0xff] %v577_v1  ;;  %v1615_v5 = vpack.i.bf16 %v587_v4, %v585_v2 }
  0x22   : > { %1616 = vrot.lane.b32.xlu0 %v1615_v5, %s1792_s23 }
  0x26   : > { %v606_v6 = vld.sshfl [vmem:[#allocation1] sm:$0xff pattern:$0x75316420]  ;;  %v607_v7 = vld.sshfl [vmem:[#allocation1 + $0x8] sm:$0xff pattern:$0x75316420] }
  0x27   : > { %v608_v8 = vld.sshfl [vmem:[#allocation1 + $0x10] sm:$0xff pattern:$0x75316420]  ;;  %622 = vst [vmem:[#allocation1] ss:$2 sm:$0xff] %v576_v0 }
  0x28   : > { %624 = vst [vmem:[#allocation1 + $0x10] ss:$2 sm:$0xff] %v577_v1  ;;  %v1620_v9 = vpack.i.bf16 %v608_v8, %v606_v6 }
  0x2a   : > { %1621 = vrot.lane.b32.xlu2 %v1620_v9, %s1793_s25 }
  0x2e   : > { %v625_v10 = vld.sshfl [vmem:[#allocation1] sm:$0xff pattern:$0x75316420]  ;;  %v626_v11 = vld.sshfl [vmem:[#allocation1 + $0x8] sm:$0xff pattern:$0x75316420] }
  0x2f   : > { %v627_v12 = vld.sshfl [vmem:[#allocation1 + $0x10] sm:$0xff pattern:$0x75316420]  ;;  %641 = vst [vmem:[#allocation1] ss:$2 sm:$0xff] %v576_v0 }
  0x30   : > { %643 = vst [vmem:[#allocation1 + $0x10] ss:$2 sm:$0xff] %v577_v1  ;;  %v1645_v29 = vpack.i.bf16 %v627_v12, %v625_v10 }
  0x36   : > { %v644_v13 = vld.sshfl [vmem:[#allocation1] sm:$0xff pattern:$0x75316420]  ;;  %v645_v14 = vld.sshfl [vmem:[#allocation1 + $0x8] sm:$0xff pattern:$0x75316420] }
  0x37   : > { %660 = vst [vmem:[#allocation1] ss:$2 sm:$0xff] %v576_v0  ;;  %v646_v15 = vld.sshfl [vmem:[#allocation1 + $0x10] sm:$0xff pattern:$0x75316420] }
  0x38   : > { %662 = vst [vmem:[#allocation1 + $0x10] ss:$2 sm:$0xff] %v577_v1  ;;  %v1625_v16 = vpack.i.bf16 %v646_v15, %v644_v13 }
  0x3a   : > { %1626 = vrot.lane.b32.xlu2 %v1625_v16, %s1794_s26 }
  0x3e   : > { %v663_v17 = vld.sshfl [vmem:[#allocation1] sm:$0xff pattern:$0x75316420]  ;;  %v664_v18 = vld.sshfl [vmem:[#allocation1 + $0x8] sm:$0xff pattern:$0x75316420] }
  0x3f   : > { %679 = vst [vmem:[#allocation1] ss:$2 sm:$0xff] %v576_v0  ;;  %v665_v19 = vld.sshfl [vmem:[#allocation1 + $0x10] sm:$0xff pattern:$0x75316420]  ;;  %v1630_v20 = vpack.i.bf16 %v664_v18, %v663_v17 }
  0x40   : > { %681 = vst [vmem:[#allocation1 + $0x10] ss:$2 sm:$0xff] %v577_v1 }
  0x41   : > { %1631 = vrot.lane.b32.xlu0 %v1630_v20, %s1795_s27 }
  0x46   : > { %v682_v21 = vld.sshfl [vmem:[#allocation1] sm:$0xff pattern:$0x75316420]  ;;  %v683_v22 = vld.sshfl [vmem:[#allocation1 + $0x8] sm:$0xff pattern:$0x75316420] }
  0x47   : > { %v1635_v23 = vpack.i.bf16 %v683_v22, %v682_v21  ;;  %698 = vst [vmem:[#allocation1] ss:$2 sm:$0xff] %v576_v0  ;;  %v684_v24 = vld.sshfl [vmem:[#allocation1 + $0x10] sm:$0xff pattern:$0x75316420] }
  0x48   : > { %700 = vst [vmem:[#allocation1 + $0x10] ss:$2 sm:$0xff] %v577_v1  ;;  %692 = vrot.lane.b32.xlu2 %v684_v24, %s1796_s29 }
  0x49   : > { %1636 = vrot.lane.b32.xlu1 %v1635_v23, %s1796_s29 }
  0x4e   : > { %v701_v25 = vld.sshfl [vmem:[#allocation1] sm:$0xff pattern:$0x75316420]  ;;  %v702_v26 = vld.sshfl [vmem:[#allocation1 + $0x8] sm:$0xff pattern:$0x75316420] }
  0x4f   : > { %v1640_v27 = vpack.i.bf16 %v702_v26, %v701_v25  ;;  %717 = vst [vmem:[#allocation1] ss:$2 sm:$0xff] %v576_v0  ;;  %v703_v28 = vld.sshfl [vmem:[#allocation1 + $0x10] sm:$0xff pattern:$0x75316420] }
  0x50   : > { %719 = vst [vmem:[#allocation1 + $0x10] ss:$2 sm:$0xff] %v577_v1 }
  0x51   : > { %1641 = vrot.lane.b32.xlu1 %v1640_v27, %s1797_s0 }
  0x56   : > { %v720_v30 = vld.sshfl [vmem:[#allocation1] sm:$0xff pattern:$0x75316420]  ;;  %v721_v31 = vld.sshfl [vmem:[#allocation1 + $0x8] sm:$0xff pattern:$0x75316420] }
  0x57   : > { %v1650_v32 = vpack.i.bf16 %v721_v31, %v720_v30  ;;  %754 = vst [vmem:[#allocation1] ss:$2 sm:$0xff] %v576_v0  ;;  %v722_v33 = vld.sshfl [vmem:[#allocation1 + $0x10] sm:$0xff pattern:$0x75316420] }
  0x58   : > { %756 = vst [vmem:[#allocation1 + $0x10] ss:$2 sm:$0xff] %v577_v1  ;;  %730 = vrot.lane.b32.xlu2 %v722_v33, %s1798_s30 }
  0x59   : > { %1646 = vrot.lane.b32.xlu1 %v1645_v29, %s1799_s18  ;;  %1651 = vrot.lane.b32.xlu0 %v1650_v32, %s1798_s30 }
  0x5e   : > { %v757_v1 = vld.sshfl [vmem:[#allocation1] sm:$0xff pattern:$0x75316420]  ;;  %v758_v26 = vld.sshfl [vmem:[#allocation1 + $0x8] sm:$0xff pattern:$0x75316420] }
  0x60   : > { %593 = vrot.lane.b32.xlu2 %v1914_v3, %s1792_s23 }
  0x61   : > { %711 = vrot.lane.b32.xlu1 %v703_v28, %s1797_s0  ;;  %673 = vrot.lane.b32.xlu0 %v665_v19, %s1795_s27 }
  0x69   : > { %652 = vrot.lane.b32.xlu1 %v645_v14, %s1794_s26  ;;  %614 = vrot.lane.b32.xlu0 %v607_v7, %s1793_s25 }
  0x71   : > { %633 = vrot.lane.b32.xlu0 %v626_v11, %s1799_s18 }
  0x84   : > { %v1933_v34 = vpop.permute.xlu2 %1621 }
  0x85   : > { %v1624_v51 = vunpack.i.h.bf16 %v1933_v34  ;;  %v1623_v52 = vunpack.i.l.bf16 %v1933_v34 }
  0x87   : > { %v621_v9 = vsel %vm618_vm2, %v1624_v51, %v1623_v52 }
  0x88   : > { %v739_v16 = vrot.slane %v621_v9, 4 }
  0x94   : > { %v1935_v35 = vpop.permute.xlu0 %1616  ;;  %v1937_v36 = vpop.permute.xlu2 %1626 }
  0x95   : > { %v1629_v47 = vunpack.i.h.bf16 %v1937_v36  ;;  %v1628_v48 = vunpack.i.l.bf16 %v1937_v36  ;;  %v1619_v53 = vunpack.i.h.bf16 %v1935_v35  ;;  %v1618_v0 = vunpack.i.l.bf16 %v1935_v35 }
  0x97   : > { %v659_v62 = vsel %vm656_vm3, %v1629_v47, %v1628_v48  ;;  %v602_v20 = vsel %vm599_vm9, %v1619_v53, %v1618_v0 }
  0x98   : > { %v748_v12 = vrot.slane %v659_v62, 4 }
  0xa2   : > { %v1943_v40 = vpop.permute.xlu2 %692 }
  0xb2   : > { %v731_v63 = vpop.permute.xlu2 %730 }
  0xb3   : > { %v1941_v39 = vpop.permute.xlu0 %1631 }
  0xb4   : > { %v1634_v43 = vunpack.i.h.bf16 %v1941_v39  ;;  %v1633_v44 = vunpack.i.l.bf16 %v1941_v39 }
  0xb6   : > { %v677_v49 = vsel %vm675_vm0, %v1633_v44, %v1634_v43 }
  0xb7   : > { %v766_v58 = vrot.slane %v677_v49, 4  ;;  %v579_v49 = vld [vmem:[%s2357_s20] sm:$0xf]  ;;  %s2353_s20 = smov 11  }
  0xb9   : > { %v788_v10 = vsel %vm781_vm7, %v757_v1, %v766_v58 }
  0xba   : > { %v594_v62 = vpop.permute.xlu2 %593 }
  0xbb   : > { %v1939_v37 = vpop.permute.xlu1 %1636 }
  0xbc   : > { %v1639_v54 = vunpack.i.h.bf16 %v1939_v37  ;;  %v1638_v55 = vunpack.i.l.bf16 %v1939_v37  ;;  %v782_v37 = vsel %vm781_vm7, %v602_v20, %v739_v16  ;;  %v899_v20 = vld [vmem:[%s2337_s2] sm:$0xff] }
  0xbe   : > { %v696_v8 = vsel %vm694_vm5, %v1638_v55, %v1639_v54  ;;  %v695_v32 = vsel %vm694_vm5, %v1639_v54, %v1943_v40 }
  0xc3   : > { %v1642_v41 = vpop.permute.xlu1 %1641 }
  0xc4   : > { %v1644_v45 = vunpack.i.h.bf16 %v1642_v41  ;;  %v1643_v46 = vunpack.i.l.bf16 %v1642_v41  ;;  %v759_v41 = vld.sshfl [vmem:[#allocation1 + $0x10] sm:$0xff pattern:$0x75316420] }
  0xc6   : > { %v715_v50 = vsel %vm713_vm1, %v1643_v46, %v1644_v45 }
  0xc7   : > { %v775_v59 = vrot.slane %v715_v50, 4 }
  0xc9   : > { %v791_v11 = vsel %vm781_vm7, %v696_v8, %v775_v59 }
  0xca   : > { %v797_v19 = vpack.c.bf16 %v791_v11, %v788_v10 }
  0xcb   : > { %v1964_v56 = vpop.permute.xlu1 %1646  ;;  %v1652_v57 = vpop.permute.xlu0 %1651 }
  0xcc   : > { %v1654_v60 = vunpack.i.h.bf16 %v1652_v57  ;;  %v1653_v61 = vunpack.i.l.bf16 %v1652_v57  ;;  %v1649_v2 = vunpack.i.h.bf16 %v1964_v56  ;;  %v1648_v3 = vunpack.i.l.bf16 %v1964_v56 }
  0xce   : > { %v734_v4 = vsel %vm732_vm4, %v1653_v61, %v1654_v60  ;;  %v733_v5 = vsel %vm732_vm4, %v1654_v60, %v731_v63  ;;  %v640_v15 = vsel %vm637_vm8, %v1649_v2, %v1648_v3  ;;  %v735_v21 = vsel %vm732_vm4, %v731_v63, %v1653_v61 }
  0xcf   : > { %v800_v6 = vpack.c.bf16 %v734_v4, %v734_v4  ;;  %v801_v7 = vpack.c.bf16 %v733_v5, %v733_v5  ;;  %v785_v29 = vsel %vm781_vm7, %v640_v15, %v748_v12  ;;  %v802_v33 = vpack.c.bf16 %v735_v21, %v735_v21 }
  0xd0   : > { %v1800_v21 = vmov 0  }
  0xd1   : > { %v809_v13 = vsel %vm807_vm6, %v800_v6, 0  ;;  %v812_v14 = vsel %vm807_vm6, %v801_v7, 0  ;;  %1655 = vset.pattern.permute.xlu0 %v1800_v21  ;;  %1696 = vset.pattern.permute.xlu2 %v1800_v21 }
  0xd2   : > { %822 = vmatpush.bf16.msra.mxu0 %v809_v13  ;;  %835 = vmatpush.bf16.msra.mxu1 %v812_v14 }
  0xd3   : > { %v712_v17 = vpop.permute.xlu1 %711  ;;  %v674_v18 = vpop.permute.xlu0 %673  ;;  %902 = vperm.xlu0 %1655, %v899_v20   ;;  %1697 = vset.pattern.permute.xlu1 %v1800_v21 }
  0xd4   : > { %v714_v22 = vsel %vm713_vm1, %v1644_v45, %v712_v17  ;;  %v716_v23 = vsel %vm713_vm1, %v712_v17, %v1643_v46  ;;  %v676_v24 = vsel %vm675_vm0, %v1634_v43, %v674_v18  ;;  %v678_v25 = vsel %vm675_vm0, %v674_v18, %v1633_v44 }
  0xd5   : > { %v776_v27 = vrot.slane %v714_v22, 4  ;;  %v767_v28 = vrot.slane %v676_v24, 4  ;;  %v777_v30 = vrot.slane %v716_v23, 4  ;;  %v768_v31 = vrot.slane %v678_v25, 4  ;;  %v908_v22 = vld [vmem:[%s2338_s3] sm:$0xff] }
  0xd6   : > { %823 = vmatpush.bf16.msra.mxu0 %v797_v19  ;;  %v794_v43 = vpack.c.bf16 %v785_v29, %v782_v37  ;;  %v697_v45 = vsel %vm694_vm5, %v1943_v40, %v1638_v55  ;;  %v815_v46 = vsel %vm807_vm6, %v802_v33, 0  ;;  %vm1440_vm6 = vcmask 3072  }
  0xd7   : > { %v789_v38 = vsel %vm781_vm7, %v758_v26, %v767_v28  ;;  %v792_v39 = vsel %vm781_vm7, %v695_v32, %v776_v27  ;;  %v790_v50 = vsel %vm781_vm7, %v759_v41, %v768_v31  ;;  %v793_v54 = vsel %vm781_vm7, %v697_v45, %v777_v30 }
  0xd8   : > { %v798_v44 = vpack.c.bf16 %v792_v39, %v789_v38  ;;  %v799_v59 = vpack.c.bf16 %v793_v54, %v790_v50 }
  0xda   : > { %824 = vmatpush.bf16.msra.mxu0 %v794_v43  ;;  %836 = vmatpush.bf16.msra.mxu1 %v798_v44 }
  0xdb   : > { %v615_v57 = vpop.permute.xlu0 %614  ;;  %v653_v58 = vpop.permute.xlu1 %652  ;;  %911 = vperm.xlu0 %1655, %v908_v22  }
  0xdc   : > { %v619_v40 = vsel %vm618_vm2, %v615_v57, %v1624_v51  ;;  %v620_v55 = vsel %vm618_vm2, %v1623_v52, %v615_v57  ;;  %v657_v60 = vsel %vm656_vm3, %v653_v58, %v1629_v47  ;;  %v658_v61 = vsel %vm656_vm3, %v1628_v48, %v653_v58 }
  0xdd   : > { %1552 = vmatmul.msk.bf16.vlgmr.msra.gmra.mxu0 %vm803_vm10, %v579_v49  ;;  %v740_v63 = vrot.slane %v620_v55, 4  ;;  %v741_v1 = vrot.slane %v619_v40, 4  ;;  %v749_v51 = vrot.slane %v658_v61, 4  ;;  %v750_v4 = vrot.slane %v657_v60, 4 }
  0xde   : > { %848 = vmatpush.bf16.msrb.mxu0 %v815_v46  ;;  %v600_v52 = vsel %vm599_vm9, %v594_v62, %v1619_v53  ;;  %v601_v47 = vsel %vm599_vm9, %v1618_v0, %v594_v62 }
  0xdf   : > { %v783_v5 = vsel %vm781_vm7, %v601_v47, %v740_v63  ;;  %v784_v53 = vsel %vm781_vm7, %v600_v52, %v741_v1 }
  0xe2   : > { %849 = vmatpush.bf16.msrb.mxu0 %v799_v59 }
  0xe3   : > { %v634_v34 = vpop.permute.xlu0 %633 }
  0xe4   : > { %v638_v36 = vsel %vm637_vm8, %v634_v34, %v1649_v2  ;;  %v639_v48 = vsel %vm637_vm8, %v1648_v3, %v634_v34  ;;  %v578_v2 = vld [vmem:[%s2347_s12] sm:$0x7] }
  0xe5   : > { %v786_v6 = vsel %vm781_vm7, %v639_v48, %v749_v51  ;;  %v787_v35 = vsel %vm781_vm7, %v638_v36, %v750_v4  ;;  %v2075_v8 = vperm.slane %v578_v2, 0  ;;  %v2077_v9 = vperm.slane %v578_v2, 1 }
  0xe6   : > { %v795_v7 = vpack.c.bf16 %v786_v6, %v783_v5  ;;  %v796_v0 = vpack.c.bf16 %v787_v35, %v784_v53  ;;  %v2079_v10 = vperm.slane %v578_v2, 2 }
  0xe8   : > { %837 = vmatpush.bf16.msra.mxu1 %v795_v7  ;;  %850 = vmatpush.bf16.msrb.mxu0 %v796_v0 }
  0xeb   : > { %1553 = vmatmul.msk.bf16.vlgmr.msra.gmra.mxu1 %vm803_vm10, %v579_v49 }
  0xed   : > { %1554 = vmatmul.msk.bf16.vlgmr.msrb.gmra.mxu0 %vm803_vm10, %v579_v49 }
 0x145   : > { %v903_v50 = vpop.permute.xlu0 %902 }
 0x14d   : > { %v912_v63 = vpop.permute.xlu0 %911 }
 0x15a   : > { %v826_v56 = vpop.f32.mrf.mxu0 }
 0x15b   : > { %v863_v12 = vmul.f32 %v2075_v8, %v826_v56 }
 0x162   : > { %v828_v3 = vpop.f32.mrf.mxu0 }
 0x168   : > { %v839_v11 = vpop.f32.mrf.mxu1 }
 0x169   : > { %v864_v13 = vmul.f32 %v2077_v9, %v839_v11 }
 0x16a   : > { %v852_v14 = vpop.f32.mrf.mxu0 }
 0x16b   : > { %v866_v15 = vadd.f32 %v864_v13, %v863_v12  ;;  %v865_v16 = vmul.f32 %v2079_v10, %v852_v14 }
 0x16d   : > { %v867_v17 = vadd.f32 %v866_v15, %v865_v16 }
 0x16f   : > { %868 = vadd.xlane.f32.xlu1 %v867_v17 }
 0x170   : > { %v841_v18 = vpop.f32.mrf.mxu1 }
 0x172   : > { %v854_v19 = vpop.f32.mrf.mxu0 }
 0x1e2   : > { %v869_v23 = vpop.xlane.xlu1 %868 }
 0x1e3   : > { %v870_v24 = vmul.f32 0.00390625, %v869_v23 }
 0x1e5   : > { %v871_v25 = vsub.f32 %v863_v12, %v870_v24  ;;  %v872_v26 = vsub.f32 %v864_v13, %v870_v24  ;;  %v873_v27 = vsub.f32 %v865_v16, %v870_v24 }
 0x1e7   : > { %v874_v28 = vmul.f32 %v871_v25, %v2075_v8  ;;  %v875_v29 = vmul.f32 %v872_v26, %v2077_v9  ;;  %v876_v30 = vmul.f32 %v873_v27, %v2079_v10 }
 0x1e9   : > { %v877_v31 = vmul.f32 %v874_v28, %v874_v28  ;;  %v878_v32 = vmul.f32 %v875_v29, %v875_v29  ;;  %v879_v33 = vmul.f32 %v876_v30, %v876_v30 }
 0x1eb   : > { %v880_v37 = vadd.f32 %v878_v32, %v877_v31 }
 0x1ed   : > { %v881_v38 = vadd.f32 %v880_v37, %v879_v33 }
 0x1ef   : > { %882 = vadd.xlane.f32.xlu2 %v881_v38 }
 0x262   : > { %v883_v39 = vpop.xlane.xlu2 %882 }
 0x263   : > { %v884_v41 = vmul.f32 0.00390625, %v883_v39 }
 0x265   : > { %v885_v43 = vadd.f32 1e-05, %v884_v41 }
 0x267   : > { %1739 = vrsqrt.f32 %v885_v43  ;;  %vm892_vm12 = vweird.f32 %v885_v43 }
 0x26d   : > { %v1740_v44 = vpop.eup %1739 }
 0x26e   : > { %v887_v45 = vmul.f32 %v1740_v44, %v885_v43  ;;  %vm893_vm11 = vweird.f32 %v1740_v44 }
 0x26f   : > { %vm894_vm13 = vmor %vm892_vm12, %vm893_vm11 }
 0x270   : > { %v888_v46 = vmul.f32 %v1740_v44, %v887_v45 }
 0x272   : > { %v889_v49 = vmul.f32 0.5, %v888_v46 }
 0x274   : > { %v890_v54 = vsub.f32 1.5, %v889_v49 }
 0x276   : > { %v891_v57 = vmul.f32 %v1740_v44, %v890_v54 }
 0x278   : > { %v895_v58 = vsel %vm894_vm13, %v1740_v44, %v891_v57 }
 0x279   : > { %v896_v59 = vmul.f32 %v895_v58, %v874_v28  ;;  %v897_v40 = vmul.f32 %v895_v58, %v875_v29  ;;  %v898_v55 = vmul.f32 %v895_v58, %v876_v30 }
 0x27b   : > { %v905_v60 = vmul.f32 %v903_v50, %v896_v59  ;;  %v906_v61 = vmul.f32 %v903_v50, %v897_v40  ;;  %v907_v62 = vmul.f32 %v903_v50, %v898_v55 }
 0x27d   : > { %v914_v1 = vadd.f32 %v912_v63, %v905_v60  ;;  %v915_v51 = vadd.f32 %v912_v63, %v906_v61  ;;  %v916_v4 = vadd.f32 %v912_v63, %v907_v62  ;;  %v2193_v61 = vld [vmem:[%s2339_s4] sm:$0xf] }
 0x27e   : > { %v1011_v62 = vld [vmem:[%s2340_s5] sm:$0xff] }
 0x27f   : > { %v917_v34 = vmax.f32 %v914_v1, 0.0  ;;  %v918_v52 = vmax.f32 %v915_v51, 0.0  ;;  %v919_v47 = vmax.f32 %v916_v4, 0.0  ;;  %v1091_v63 = vld [vmem:[#allocation2 + $0x78] sm:$0xff]  ;;  %v1090_v4 = vld [vmem:[#allocation2 + $0x70] sm:$0xff] }
 0x280   : > { %v1107_v1 = vld [vmem:[#allocation2 + $0xf8] sm:$0xff]  ;;  %1124 = vmatpush.msra.mxu2 %v1091_v63  ;;  %v1080_v63 = vld [vmem:[#allocation2 + $0x20] sm:$0xff] }
 0x281   : > { %v2094_v36 = vmul.f32 %v917_v34, %v2075_v8  ;;  %v2097_v48 = vmul.f32 %v918_v52, %v2077_v9  ;;  %v2100_v5 = vmul.f32 %v919_v47, %v2079_v10 }
 0x282   : > { %1125 = vmatpush.msra.mxu2 %v1090_v4  ;;  %v1079_v4 = vld [vmem:[#allocation2 + $0x18] sm:$0xff] }
 0x283   : > { %991 = vrot.lane.b32.xlu1 %v2100_v5, %s1798_s30  ;;  %v1666_v6 = vpack.i.bf16 %v2097_v48, %v2094_v36  ;;  %v1681_v53 = vpack.i.bf16 %v2100_v5, %v2094_v36 }
 0x285   : > { %1667 = vrot.lane.b32.xlu2 %v1666_v6, %s1797_s0  ;;  %1657 = vrot.lane.b32.xlu0 %v1666_v6, %s1798_s30  ;;  %s1801_s30 = smov 118  }
 0x28b   : > { %1682 = vrot.lane.b32.xlu1 %v1681_v53, %s1794_s26 }
 0x28d   : > { %1677 = vrot.lane.b32.xlu2 %v1681_v53, %s1799_s18  ;;  %1662 = vrot.lane.b32.xlu0 %v1666_v6, %s1796_s29 }
 0x293   : > { %1692 = vrot.lane.b32.xlu1 %v1681_v53, %s1793_s25 }
 0x295   : > { %1687 = vrot.lane.b32.xlu2 %v1681_v53, %s1792_s23  ;;  %1672 = vrot.lane.b32.xlu0 %v1666_v6, %s1795_s27 }
 0x29b   : > { %926 = vrot.lane.b32.xlu1 %v2097_v48, %s1792_s23 }
 0x29d   : > { %953 = vrot.lane.b32.xlu2 %v2097_v48, %s1794_s26  ;;  %973 = vrot.lane.b32.xlu0 %v2100_v5, %s1796_s29 }
 0x2a5   : > { %982 = vrot.lane.b32.xlu0 %v2100_v5, %s1797_s0  ;;  %1014 = vperm.xlu2 %1696, %v1011_v62   ;;  %v1113_v62 = vld [vmem:[#allocation2 + $0x128] sm:$0xff] }
 0x2ad   : > { %964 = vrot.lane.b32.xlu0 %v2100_v5, %s1795_s27 }
 0x2b5   : > { %944 = vrot.lane.b32.xlu0 %v2097_v48, %s1799_s18  ;;  %s1802_s18 = smov 119  }
 0x2bd   : > { %935 = vrot.lane.b32.xlu0 %v2097_v48, %s1793_s25  ;;  %s2358_s25 = smov 11  }
 0x2df   : > { %v2130_v7 = vpop.permute.xlu2 %1667 }
 0x2e0   : > { %v1670_v19 = vunpack.i.h.bf16 %v2130_v7  ;;  %v1669_v20 = vunpack.i.l.bf16 %v2130_v7  ;;  %v1089_v7 = vld [vmem:[#allocation2 + $0x68] sm:$0xff] }
 0x2e1   : > { %1126 = vmatpush.msra.mxu2 %v1089_v7  ;;  %v1109_v7 = vld [vmem:[#allocation2 + $0x108] sm:$0xff] }
 0x2e2   : > { %v985_v27 = vsel %vm713_vm1, %v1669_v20, %v1670_v19 }
 0x2e7   : > { %v2145_v25 = vpop.permute.xlu2 %1677 }
 0x2e8   : > { %v1680_v38 = vunpack.i.h.bf16 %v2145_v25  ;;  %v1679_v39 = vunpack.i.l.bf16 %v2145_v25 }
 0x2ea   : > { %v950_v57 = vsel %vm637_vm8, %v1680_v38, %v1679_v39 }
 0x2ef   : > { %v2159_v43 = vpop.permute.xlu2 %1687 }
 0x2f0   : > { %v1690_v50 = vunpack.i.h.bf16 %v2159_v43  ;;  %v1689_v54 = vunpack.i.l.bf16 %v2159_v43  ;;  %v1122_v43 = vld [vmem:[#allocation2 + $0x170] sm:$0xff] }
 0x2f2   : > { %v932_v55 = vsel %vm599_vm9, %v1690_v50, %v1689_v54 }
 0x2f5   : > { %v992_v35 = vpop.permute.xlu1 %991 }
 0x2f7   : > { %v1658_v0 = vpop.permute.xlu0 %1657 }
 0x2f8   : > { %v1660_v56 = vunpack.i.h.bf16 %v1658_v0  ;;  %v1659_v2 = vunpack.i.l.bf16 %v1658_v0  ;;  %v1105_v0 = vld [vmem:[#allocation2 + $0xe8] sm:$0xff] }
 0x2fa   : > { %v994_v3 = vsel %vm732_vm4, %v1659_v2, %v1660_v56  ;;  %v993_v11 = vsel %vm732_vm4, %v1660_v56, %v992_v35  ;;  %v995_v12 = vsel %vm732_vm4, %v992_v35, %v1659_v2  ;;  %v1106_v35 = vld [vmem:[#allocation2 + $0xf0] sm:$0xff]  ;;  %v1088_v56 = vld [vmem:[#allocation2 + $0x60] sm:$0xff] }
 0x2fb   : > { %v1008_v13 = vpack.c.bf16 %v994_v3, %v994_v3  ;;  %v1009_v14 = vpack.c.bf16 %v993_v11, %v993_v11  ;;  %v1010_v15 = vpack.c.bf16 %v995_v12, %v995_v12  ;;  %v1104_v2 = vld [vmem:[#allocation2 + $0xe0] sm:$0xff]  ;;  %v1087_v3 = vld [vmem:[#allocation2 + $0x58] sm:$0xff]  ;;  %1127 = vmatpush.msra.mxu2 %v1088_v56 }
 0x2fc   : > { %v1103_v12 = vld [vmem:[#allocation2 + $0xd8] sm:$0xff]  ;;  %v1092_v56 = vld [vmem:[#allocation2 + $0x80] sm:$0xff] }
 0x2fd   : > { %v1022_v16 = vsel %vm781_vm7, %v1008_v13, 0  ;;  %v1025_v17 = vsel %vm781_vm7, %v1009_v14, 0  ;;  %v1028_v18 = vsel %vm781_vm7, %v1010_v15, 0  ;;  %v2143_v21 = vpop.permute.xlu1 %1682  ;;  %v1086_v13 = vld [vmem:[#allocation2 + $0x50] sm:$0xff]  ;;  %1128 = vmatpush.msra.mxu2 %v1087_v3 }
 0x2fe   : > { %1033 = vmatpush.bf16.msra.mxu3 %v1022_v16  ;;  %1046 = vmatpush.bf16.msra.mxu0 %v1025_v17  ;;  %v1685_v30 = vunpack.i.h.bf16 %v2143_v21  ;;  %v1684_v31 = vunpack.i.l.bf16 %v2143_v21 }
 0x2ff   : > { %1059 = vmatpush.bf16.msrb.mxu1 %v1028_v18  ;;  %v1663_v22 = vpop.permute.xlu0 %1662  ;;  %v1102_v18 = vld [vmem:[#allocation2 + $0xd0] sm:$0xff]  ;;  %1129 = vmatpush.msra.mxu2 %v1086_v13 }
 0x300   : > { %v1665_v23 = vunpack.i.h.bf16 %v1663_v22  ;;  %v1664_v24 = vunpack.i.l.bf16 %v1663_v22  ;;  %v959_v49 = vsel %vm656_vm3, %v1685_v30, %v1684_v31  ;;  %v1084_v22 = vld [vmem:[#allocation2 + $0x40] sm:$0xff] }
 0x301   : > { %v999_v59 = vpack.c.bf16 %v959_v49, %v950_v57  ;;  %v1121_v49 = vld [vmem:[#allocation2 + $0x168] sm:$0xff]  ;;  %v1099_v57 = vld [vmem:[#allocation2 + $0xb8] sm:$0xff] }
 0x302   : > { %v976_v26 = vsel %vm694_vm5, %v1664_v24, %v1665_v23 }
 0x303   : > { %v1005_v28 = vpack.c.bf16 %v985_v27, %v976_v26 }
 0x305   : > { %1034 = vmatpush.bf16.msra.mxu3 %v1005_v28  ;;  %v2153_v37 = vpop.permute.xlu1 %1692 }
 0x306   : > { %v1695_v45 = vunpack.i.h.bf16 %v2153_v37  ;;  %v1694_v46 = vunpack.i.l.bf16 %v2153_v37  ;;  %v1119_v37 = vld [vmem:[#allocation2 + $0x158] sm:$0xff] }
 0x307   : > { %v1673_v29 = vpop.permute.xlu0 %1672 }
 0x308   : > { %v1675_v32 = vunpack.i.h.bf16 %v1673_v29  ;;  %v1674_v33 = vunpack.i.l.bf16 %v1673_v29  ;;  %v941_v40 = vsel %vm618_vm2, %v1695_v45, %v1694_v46 }
 0x309   : > { %v996_v60 = vpack.c.bf16 %v941_v40, %v932_v55  ;;  %v1098_v40 = vld [vmem:[#allocation2 + $0xb0] sm:$0xff] }
 0x30a   : > { %v967_v41 = vsel %vm675_vm0, %v1674_v33, %v1675_v32  ;;  %v1114_v55 = vld [vmem:[#allocation2 + $0x130] sm:$0xff] }
 0x30b   : > { %v1002_v44 = vpack.c.bf16 %v967_v41, %v2094_v36 }
 0x30d   : > { %1035 = vmatpush.bf16.msra.mxu3 %v1002_v44  ;;  %v1123_v44 = vld [vmem:[#allocation2 + $0x178] sm:$0xff] }
 0x30f   : > { %v974_v58 = vpop.permute.xlu0 %973 }
 0x310   : > { %v975_v34 = vsel %vm694_vm5, %v1665_v23, %v974_v58  ;;  %v977_v52 = vsel %vm694_vm5, %v974_v58, %v1664_v24  ;;  %v1100_v23 = vld [vmem:[#allocation2 + $0xc0] sm:$0xff]  ;;  %v954_v24 = vpop.permute.xlu2 %953  ;;  %v1115_v58 = vld [vmem:[#allocation2 + $0x138] sm:$0xff]  ;;  %vm1375_vm5 = vcmask 130048  }
 0x311   : > { %1036 = vmatpush.bf16.msra.mxu3 %v999_v59  ;;  %v957_v28 = vsel %vm656_vm3, %v954_v24, %v1685_v30  ;;  %v1082_v59 = vld [vmem:[#allocation2 + $0x30] sm:$0xff] }
 0x315   : > { %1037 = vmatpush.bf16.msra.mxu3 %v996_v60  ;;  %v1081_v60 = vld [vmem:[#allocation2 + $0x28] sm:$0xff] }
 0x317   : > { %v983_v51 = vpop.permute.xlu0 %982 }
 0x318   : > { %v984_v47 = vsel %vm713_vm1, %v1670_v19, %v983_v51  ;;  %v986_v36 = vsel %vm713_vm1, %v983_v51, %v1669_v20  ;;  %1555 = vmatmul.msk.bf16.vlgmr.msra.gmra.mxu3 %vm1017_vm14, %v2193_v61  ;;  %v1085_v19 = vld [vmem:[#allocation2 + $0x48] sm:$0xff]  ;;  %v1112_v51 = vld [vmem:[#allocation2 + $0x120] sm:$0xff]  ;;  %v1015_v3 = vpop.permute.xlu2 %1014 }
 0x319   : > { %v1006_v6 = vpack.c.bf16 %v984_v47, %v975_v34  ;;  %v1007_v53 = vpack.c.bf16 %v986_v36, %v977_v52  ;;  %1144 = vmatpush.msrb.mxu3 %v1107_v1  ;;  %v1101_v20 = vld [vmem:[#allocation2 + $0xc8] sm:$0xff]  ;;  %1130 = vmatpush.msra.mxu2 %v1085_v19  ;;  %v1096_v1 = vld [vmem:[#allocation2 + $0xa0] sm:$0xff]  ;;  %v1095_v34 = vld [vmem:[#allocation2 + $0x98] sm:$0xff] }
 0x31a   : > { %v1111_v52 = vld [vmem:[#allocation2 + $0x118] sm:$0xff]  ;;  %v1078_v47 = vld [vmem:[#allocation2 + $0x10] sm:$0xff] }
 0x31b   : > { %1047 = vmatpush.bf16.msra.mxu0 %v1006_v6  ;;  %1060 = vmatpush.bf16.msrb.mxu1 %v1007_v53  ;;  %v1094_v36 = vld [vmem:[#allocation2 + $0x90] sm:$0xff]  ;;  %v1077_v53 = vld [vmem:[#allocation2 + $0x8] sm:$0xff] }
 0x31c   : > { %1145 = vmatpush.msrb.mxu3 %v1106_v35  ;;  %1131 = vmatpush.msra.mxu2 %v1084_v22  ;;  %v1110_v6 = vld [vmem:[#allocation2 + $0x110] sm:$0xff]  ;;  %v1093_v35 = vld [vmem:[#allocation2 + $0x88] sm:$0xff] }
 0x31e   : > { %1146 = vmatpush.msrb.mxu3 %v1105_v0  ;;  %v1076_v0 = vld [vmem:[#allocation2] sm:$0xff] }
 0x31f   : > { %v965_v11 = vpop.permute.xlu0 %964 }
 0x320   : > { %v966_v14 = vsel %vm675_vm0, %v1675_v32, %v965_v11  ;;  %v968_v15 = vsel %vm675_vm0, %v965_v11, %v1674_v33  ;;  %1147 = vmatpush.msrb.mxu3 %v1104_v2  ;;  %v1108_v2 = vld [vmem:[#allocation2 + $0x100] sm:$0xff] }
 0x321   : > { %v1003_v16 = vpack.c.bf16 %v966_v14, %v2097_v48  ;;  %v1004_v17 = vpack.c.bf16 %v968_v15, %v2100_v5  ;;  %v958_v48 = vsel %vm656_vm3, %v1684_v31, %v954_v24  ;;  %v927_v31 = vpop.permute.xlu1 %926 }
 0x322   : > { %1148 = vmatpush.msrb.mxu3 %v1103_v12  ;;  %v930_v25 = vsel %vm599_vm9, %v927_v31, %v1690_v50  ;;  %v931_v21 = vsel %vm599_vm9, %v1689_v54, %v927_v31  ;;  %v1116_v50 = vld [vmem:[#allocation2 + $0x140] sm:$0xff]  ;;  %v1083_v54 = vld [vmem:[#allocation2 + $0x38] sm:$0xff] }
 0x323   : > { %1048 = vmatpush.bf16.msra.mxu0 %v1003_v16  ;;  %1061 = vmatpush.bf16.msrb.mxu1 %v1004_v17 }
 0x324   : > { %1149 = vmatpush.msrb.mxu3 %v1102_v18  ;;  %1132 = vmatpush.msra.mxu2 %v1083_v54 }
 0x326   : > { %1150 = vmatpush.msrb.mxu3 %v1101_v20  ;;  %1133 = vmatpush.msra.mxu2 %v1082_v59 }
 0x327   : > { %v945_v26 = vpop.permute.xlu0 %944 }
 0x328   : > { %v948_v5 = vsel %vm637_vm8, %v945_v26, %v1680_v38  ;;  %v949_v27 = vsel %vm637_vm8, %v1679_v39, %v945_v26  ;;  %1151 = vmatpush.msrb.mxu3 %v1100_v23  ;;  %1134 = vmatpush.msra.mxu2 %v1081_v60 }
 0x329   : > { %v1000_v29 = vpack.c.bf16 %v958_v48, %v949_v27  ;;  %v1001_v32 = vpack.c.bf16 %v957_v28, %v948_v5 }
 0x32a   : > { %1152 = vmatpush.msrb.mxu3 %v1099_v57  ;;  %1135 = vmatpush.msra.mxu2 %v1080_v63 }
 0x32b   : > { %1049 = vmatpush.bf16.msra.mxu0 %v1000_v29  ;;  %1062 = vmatpush.bf16.msrb.mxu1 %v1001_v32 }
 0x32c   : > { %1153 = vmatpush.msrb.mxu3 %v1098_v40  ;;  %1136 = vmatpush.msra.mxu2 %v1079_v4 }
 0x32e   : > { %1137 = vmatpush.msra.mxu2 %v1078_v47 }
 0x32f   : > { %v936_v33 = vpop.permute.xlu0 %935 }
 0x330   : > { %v939_v30 = vsel %vm618_vm2, %v936_v33, %v1695_v45  ;;  %v940_v38 = vsel %vm618_vm2, %v1694_v46, %v936_v33  ;;  %v1120_v45 = vld [vmem:[#allocation2 + $0x160] sm:$0xff]  ;;  %v1117_v46 = vld [vmem:[#allocation2 + $0x148] sm:$0xff]  ;;  %1138 = vmatpush.msra.mxu2 %v1077_v53 }
 0x331   : > { %v997_v39 = vpack.c.bf16 %v940_v38, %v931_v21  ;;  %v998_v41 = vpack.c.bf16 %v939_v30, %v930_v25 }
 0x332   : > { %1139 = vmatpush.msra.mxu2 %v1076_v0 }
 0x333   : > { %1050 = vmatpush.bf16.msra.mxu0 %v997_v39  ;;  %1063 = vmatpush.bf16.msrb.mxu1 %v998_v41 }
 0x336   : > { %1556 = vmatmul.msk.bf16.vlgmr.msra.gmra.mxu0 %vm1017_vm14, %v2193_v61  ;;  %1557 = vmatmul.msk.bf16.vlgmr.msrb.gmra.mxu1 %vm1017_vm14, %v2193_v61  ;;  %v1097_v61 = vld [vmem:[#allocation2 + $0xa8] sm:$0xff] }
 0x337   : > { %1164 = vmatpush.msrb.mxu0 %v1123_v44  ;;  %1154 = vmatpush.msrb.mxu3 %v1097_v61 }
 0x339   : > { %1165 = vmatpush.msrb.mxu0 %v1122_v43  ;;  %1155 = vmatpush.msrb.mxu3 %v1096_v1 }
 0x33b   : > { %1166 = vmatpush.msrb.mxu0 %v1121_v49  ;;  %1156 = vmatpush.msrb.mxu3 %v1095_v34  ;;  %v1294_v34 = vld [vmem:[%s2343_s8 + $0x8] sm:$0xff] }
 0x33d   : > { %1167 = vmatpush.msrb.mxu0 %v1120_v45  ;;  %1157 = vmatpush.msrb.mxu3 %v1094_v36 }
 0x33f   : > { %1168 = vmatpush.msrb.mxu0 %v1119_v37  ;;  %1158 = vmatpush.msrb.mxu3 %v1093_v35  ;;  %v1575_v37 = vld [vmem:[%s2341_s6] sm:$0xff] }
 0x341   : > { %1169 = vmatpush.msrb.mxu0 %v1118_v42  ;;  %1159 = vmatpush.msrb.mxu3 %v1092_v56  ;;  %v2272_v42 = vld [vmem:[%s2348_s13] ss:$0 sm:$0xff] }
 0x343   : > { %1170 = vmatpush.msrb.mxu0 %v1117_v46 }
 0x345   : > { %1171 = vmatpush.msrb.mxu0 %v1116_v50 }
 0x347   : > { %1172 = vmatpush.msrb.mxu0 %v1115_v58  ;;  %v1279_v58 = vld [vmem:[%s2342_s7] sm:$0xff] }
 0x349   : > { %1173 = vmatpush.msrb.mxu0 %v1114_v55 }
 0x34b   : > { %1174 = vmatpush.msrb.mxu0 %v1113_v62 }
 0x34d   : > { %1175 = vmatpush.msrb.mxu0 %v1112_v51 }
 0x34f   : > { %1176 = vmatpush.msrb.mxu0 %v1111_v52  ;;  %v1293_v52 = vld [vmem:[%s2343_s8] sm:$0xff] }
 0x351   : > { %1177 = vmatpush.msrb.mxu0 %v1110_v6 }
 0x353   : > { %1178 = vmatpush.msrb.mxu0 %v1109_v7 }
 0x355   : > { %1179 = vmatpush.msrb.mxu0 %v1108_v2 }
 0x39b   : > { %v1039_v11 = vpop.f32.mrf.mxu3 }
 0x39c   : > { %v1040_v12 = vadd.f32 %v1039_v11, %v1015_v3 }
 0x39e   : > { %v1069_v13 = vmax.f32 %v1040_v12, 0.0 }
 0x3a0   : > { %v1072_v14 = vmul.f32 %v1069_v13, %v2075_v8 }
 0x3a2   : > { %1140 = vmatmul.f32.vlgmr.msra.gmra.mxu2 %v1072_v14 }
 0x3a3   : > { %v1041_v15 = vpop.f32.mrf.mxu3 }
 0x3b3   : > { %v1052_v16 = vpop.f32.mrf.mxu0  ;;  %v1065_v17 = vpop.f32.mrf.mxu1 }
 0x3b4   : > { %v1053_v18 = vadd.f32 %v1052_v16, %v1015_v3  ;;  %v1066_v19 = vadd.f32 %v1065_v17, %v1015_v3 }
 0x3b6   : > { %v1070_v20 = vmax.f32 %v1053_v18, 0.0  ;;  %v1071_v22 = vmax.f32 %v1066_v19, 0.0 }
 0x3b8   : > { %v1073_v23 = vmul.f32 %v1070_v20, %v2077_v9  ;;  %v1074_v24 = vmul.f32 %v1071_v22, %v2079_v10  ;;  %v1280_v9 = vld [vmem:[%s2342_s7 + $0x8] sm:$0xff] }
 0x3ba   : > { %1160 = vmatmul.f32.vlgmr.msrb.gmra.mxu3 %v1073_v23  ;;  %1180 = vmatmul.f32.vlgmr.msrb.gmra.mxu0 %v1074_v24 }
 0x3bb   : > { %v1054_v26 = vpop.f32.mrf.mxu0  ;;  %v1067_v48 = vpop.f32.mrf.mxu1 }
 0x425   : > { %v1141_v5 = vpop.f32.mrf.mxu2 }
 0x437   : > { %v1181_v8 = vpop.f32.mrf.mxu0 }
 0x43d   : > { %v1161_v27 = vpop.f32.mrf.mxu3 }
 0x43e   : > { %v1162_v28 = vadd.f32 %v1161_v27, %v1141_v5 }
 0x440   : > { %v1182_v29 = vadd.f32 %v1181_v8, %v1162_v28 }
 0x442   : > { %1198 = vrot.lane.b32.xlu2 %v1182_v29, %s1801_s30  ;;  %1196 = vrot.lane.b32.xlu0 %v1182_v29, %s1802_s18 }
 0x443   : > { %1200 = vrot.lane.b32.xlu1 %v1182_v29, %s1803_s22 }
 0x44a   : > { %1192 = vrot.lane.b32.xlu2 %v1182_v29, %s1794_s26  ;;  %1190 = vrot.lane.b32.xlu0 %v1182_v29, %s1804_s19 }
 0x44b   : > { %1194 = vrot.lane.b32.xlu1 %v1182_v29, %s1795_s27 }
 0x452   : > { %1188 = vrot.lane.b32.xlu0 %v1182_v29, %s1805_s1 }
 0x453   : > { %1186 = vrot.lane.b32.xlu1 %v1182_v29, %s2353_s20 }
 0x45a   : > { %1288 = vperm.xlu0 %1655, %v1280_v9  }
 0x49c   : > { %v1199_v33 = vpop.permute.xlu2 %1198 }
 0x4a4   : > { %v1193_v41 = vpop.permute.xlu2 %1192 }
 0x4b4   : > { %v1197_v10 = vpop.permute.xlu0 %1196 }
 0x4b5   : > { %v1201_v32 = vpop.permute.xlu1 %1200  ;;  %v1205_v21 = vpack.c.bf16 %v1199_v33, %v1197_v10 }
 0x4b6   : > { %v1206_v31 = vpack.c.bf16 %v1201_v32, %v1201_v32 }
 0x4b8   : > { %v1216_v25 = vsel %vm781_vm7, %v1206_v31, 0  ;;  %vm1444_vm7 = vcmask 7172  }
 0x4b9   : > { %1221 = vmatpush.bf16.msra.mxu1 %v1216_v25 }
 0x4bc   : > { %v1191_v30 = vpop.permute.xlu0 %1190 }
 0x4bd   : > { %1222 = vmatpush.bf16.msra.mxu1 %v1205_v21  ;;  %v1195_v38 = vpop.permute.xlu1 %1194  ;;  %v1203_v44 = vpack.c.bf16 %v1193_v41, %v1191_v30  ;;  %v1355_v21 = vld [vmem:[%s2345_s10 + $0x8] sm:$0xff]  ;;  %v1354_v30 = vld [vmem:[%s2345_s10] sm:$0xff] }
 0x4be   : > { %v1204_v39 = vpack.c.bf16 %v1195_v38, %v1182_v29 }
 0x4c1   : > { %1223 = vmatpush.bf16.msra.mxu1 %v1204_v39 }
 0x4c4   : > { %v1189_v43 = vpop.permute.xlu0 %1188 }
 0x4c5   : > { %1224 = vmatpush.bf16.msra.mxu1 %v1203_v44  ;;  %v1187_v49 = vpop.permute.xlu1 %1186 }
 0x4c6   : > { %v1202_v45 = vpack.c.bf16 %v1189_v43, %v1187_v49 }
 0x4c9   : > { %1225 = vmatpush.bf16.msra.mxu1 %v1202_v45  ;;  %v1576_v45 = vld [vmem:[%s2344_s9 + $0x4] sm:$0xf] }
 0x4cc   : > { %1562 = vmatmul.msk.bf16.vlgmr.msra.gmra.mxu1 %vm1017_vm14, %v1575_v37  ;;  %v1289_v47 = vpop.permute.xlu0 %1288  ;;  %v1567_v37 = vld [vmem:[%s2344_s9 + $0x8] sm:$0xf0] }
 0x549   : > { %v1227_v46 = vpop.f32.mrf.mxu1 }
 0x54a   : > { %v1235_v50 = vmul.f32 %v2272_v42, %v1227_v46  ;;  %v1570_v46 = vor.u32 %v1576_v45, %v1567_v37 }
 0x54c   : > { %1237 = vadd.xlane.f32.xlu2 %v1235_v50 }
 0x551   : > { %v1229_v54 = vpop.f32.mrf.mxu1 }
 0x552   : > { %v1236_v57 = vmul.f32 %v2272_v42, %v1229_v54 }
 0x554   : > { %1239 = vadd.xlane.f32.xlu1 %v1236_v57 }
 0x56d   : > { %1283 = vperm.xlu1 %1697, %v1279_v58  }
 0x5bf   : > { %v1238_v59 = vpop.xlane.xlu2 %1237 }
 0x5c0   : > { %v1241_v40 = vmul.f32 0.015625, %v1238_v59 }
 0x5c2   : > { %v1243_v55 = vsub.f32 %v1235_v50, %v1241_v40 }
 0x5c4   : > { %v1245_v60 = vmul.f32 %v2272_v42, %v1243_v55 }
 0x5c6   : > { %v1247_v61 = vmul.f32 %v1245_v60, %v1245_v60 }
 0x5c7   : > { %v1240_v62 = vpop.xlane.xlu1 %1239 }
 0x5c8   : > { %v1242_v63 = vmul.f32 0.015625, %v1240_v62  ;;  %1249 = vadd.xlane.f32.xlu0 %v1247_v61 }
 0x5ca   : > { %v1244_v1 = vsub.f32 %v1236_v57, %v1242_v63 }
 0x5cc   : > { %v1246_v51 = vmul.f32 %v2272_v42, %v1244_v1 }
 0x5ce   : > { %v1248_v4 = vmul.f32 %v1246_v51, %v1246_v51 }
 0x5d0   : > { %1251 = vadd.xlane.f32.xlu2 %v1248_v4 }
 0x5dc   : > { %1302 = vperm.xlu0 %1655, %v1294_v34  }
 0x5df   : > { %v1284_v20 = vpop.permute.xlu1 %1283 }
 0x5e8   : > { %1297 = vperm.xlu2 %1696, %v1293_v52  }
 0x63b   : > { %v1250_v36 = vpop.xlane.xlu0 %1249 }
 0x63c   : > { %v1253_v6 = vmul.f32 0.015625, %v1250_v36 }
 0x63e   : > { %v1255_v53 = vadd.f32 1e-05, %v1253_v6 }
 0x640   : > { %1741 = vrsqrt.f32 %v1255_v53  ;;  %vm1263_vm0 = vweird.f32 %v1255_v53 }
 0x643   : > { %v1252_v35 = vpop.xlane.xlu2 %1251 }
 0x644   : > { %v1254_v7 = vmul.f32 0.015625, %v1252_v35 }
 0x646   : > { %v1742_v0 = vpop.eup %1741  ;;  %v1256_v56 = vadd.f32 1e-05, %v1254_v7 }
 0x647   : > { %v1258_v2 = vmul.f32 %v1742_v0, %v1255_v53  ;;  %vm1264_vm15 = vweird.f32 %v1742_v0 }
 0x648   : > { %1743 = vrsqrt.f32 %v1256_v56  ;;  %vm1265_vm1 = vmor %vm1263_vm0, %vm1264_vm15  ;;  %vm1273_vm3 = vweird.f32 %v1256_v56 }
 0x649   : > { %v1259_v3 = vmul.f32 %v1742_v0, %v1258_v2 }
 0x64b   : > { %v1260_v11 = vmul.f32 0.5, %v1259_v3  ;;  %v1298_v26 = vpop.permute.xlu2 %1297  ;;  %v1565_v3 = vld [vmem:[%s2344_s9] sm:$0xf] }
 0x64d   : > { %v1261_v12 = vsub.f32 1.5, %v1260_v11  ;;  %v1577_v11 = vld [vmem:[%s2344_s9 + $0x4] sm:$0xf0] }
 0x64e   : > { %v1744_v13 = vpop.eup %1743  ;;  %v1303_v8 = vpop.permute.xlu0 %1302 }
 0x64f   : > { %v1268_v14 = vmul.f32 %v1744_v13, %v1256_v56  ;;  %v1262_v15 = vmul.f32 %v1742_v0, %v1261_v12  ;;  %vm1274_vm2 = vweird.f32 %v1744_v13 }
 0x650   : > { %vm1275_vm4 = vmor %vm1273_vm3, %vm1274_vm2 }
 0x651   : > { %v1269_v16 = vmul.f32 %v1744_v13, %v1268_v14  ;;  %v1266_v17 = vsel %vm1265_vm1, %v1742_v0, %v1262_v15 }
 0x652   : > { %v1277_v18 = vmul.f32 %v1266_v17, %v1245_v60 }
 0x653   : > { %v1270_v19 = vmul.f32 0.5, %v1269_v16 }
 0x654   : > { %v1291_v23 = vmul.f32 %v1284_v20, %v1277_v18 }
 0x655   : > { %v1271_v22 = vsub.f32 1.5, %v1270_v19 }
 0x656   : > { %v1305_v27 = vadd.f32 %v1298_v26, %v1291_v23 }
 0x657   : > { %v1272_v24 = vmul.f32 %v1744_v13, %v1271_v22 }
 0x658   : > { %v1307_v9 = vmax.f32 %v1305_v27, 0.0 }
 0x659   : > { %v1276_v48 = vsel %vm1275_vm4, %v1744_v13, %v1272_v24  ;;  %v1566_v13 = vor.u32 %v1577_v11, %v1565_v3 }
 0x65a   : > { %v1278_v5 = vmul.f32 %v1276_v48, %v1246_v51  ;;  %v1309_v31 = vmul.f32 %v2272_v42, %v1307_v9 }
 0x65c   : > { %v1292_v28 = vmul.f32 %v1289_v47, %v1278_v5 }
 0x65e   : > { %v1306_v29 = vadd.f32 %v1303_v8, %v1292_v28  ;;  %v1411_v28 = vld [vmem:[%s2349_s14] sm:$0xff] }
 0x660   : > { %v1308_v10 = vmax.f32 %v1306_v29, 0.0  ;;  %v1438_v29 = vld [vmem:[%s2350_s15] sm:$0xff] }
 0x662   : > { %v1310_v32 = vmul.f32 %v2272_v42, %v1308_v10 }
 0x664   : > { %v1708_v33 = vpack.i.bf16 %v1310_v32, %v1309_v31  ;;  %v1349_v25 = vpack.c.bf16 %v1310_v32, %v1309_v31 }
 0x666   : > { %1709 = vrot.lane.b32.xlu0 %v1708_v33, %s1795_s27  ;;  %1704 = vrot.lane.b32.xlu2 %v1708_v33, %s1802_s18 }
 0x667   : > { %1699 = vrot.lane.b32.xlu1 %v1708_v33, %s1801_s30 }
 0x66e   : > { %1724 = vrot.lane.b32.xlu0 %v1708_v33, %s1805_s1  ;;  %1719 = vrot.lane.b32.xlu2 %v1708_v33, %s1804_s19 }
 0x66f   : > { %1714 = vrot.lane.b32.xlu1 %v1708_v33, %s1794_s26 }
 0x676   : > { %1363 = vperm.xlu0 %1655, %v1355_v21   ;;  %1734 = vrot.lane.b32.xlu2 %v1708_v33, %s1803_s22 }
 0x677   : > { %1729 = vrot.lane.b32.xlu1 %v1708_v33, %s2358_s25  ;;  %s1550_s25 = sshll.u32 %s2360_s28, 2 }
 0x678   : > { %s570_s19 = scalar_lea.vmem %s2351_s16, %s1550_s25  ;;  %s574_s29 = scalar_lea.vmem %s2352_s17, %s1550_s25 }
 0x67f   : > { %1358 = vperm.xlu1 %1697, %v1354_v30  }
 0x6c0   : > { %v1705_v38 = vpop.permute.xlu2 %1704 }
 0x6c1   : > { %v1707_v58 = vunpack.i.h.bf16 %v1705_v38  ;;  %v1706_v59 = vunpack.i.l.bf16 %v1705_v38 }
 0x6c3   : > { %v1351_v62 = vpack.c.bf16 %v1707_v58, %v1706_v59 }
 0x6c8   : > { %v1720_v39 = vpop.permute.xlu2 %1719 }
 0x6c9   : > { %v1722_v34 = vunpack.i.h.bf16 %v1720_v39  ;;  %v1721_v52 = vunpack.i.l.bf16 %v1720_v39 }
 0x6cb   : > { %v1347_v35 = vpack.c.bf16 %v1722_v34, %v1721_v52 }
 0x6d0   : > { %v1735_v41 = vpop.permute.xlu2 %1734 }
 0x6d1   : > { %v1737_v44 = vunpack.i.h.bf16 %v1735_v41  ;;  %v1736_v43 = vunpack.i.l.bf16 %v1735_v41 }
 0x6d3   : > { %v1353_v49 = vpack.c.bf16 %v1737_v44, %v1736_v43 }
 0x6d5   : > { %1400 = vmatpush.bf16.msra.mxu3 %v1353_v49 }
 0x6d8   : > { %1571 = vmatmul.msk.bf16.vlgmr.msra.gmra.mxu3 %vm1375_vm5, %v1570_v46  ;;  %v1710_v55 = vpop.permute.xlu0 %1709 }
 0x6d9   : > { %v1700_v50 = vpop.permute.xlu1 %1699  ;;  %v1712_v60 = vunpack.i.h.bf16 %v1710_v55  ;;  %v1711_v61 = vunpack.i.l.bf16 %v1710_v55 }
 0x6da   : > { %v1702_v54 = vunpack.i.h.bf16 %v1700_v50  ;;  %v1701_v57 = vunpack.i.l.bf16 %v1700_v50 }
 0x6db   : > { %v1350_v63 = vpack.c.bf16 %v1712_v60, %v1711_v61 }
 0x6dc   : > { %v1352_v40 = vpack.c.bf16 %v1702_v54, %v1701_v57 }
 0x6de   : > { %1379 = vmatpush.bf16.msrb.mxu2 %v1352_v40 }
 0x6e0   : > { %v1725_v36 = vpop.permute.xlu0 %1724 }
 0x6e1   : > { %v1715_v1 = vpop.permute.xlu1 %1714  ;;  %v1727_v6 = vunpack.i.h.bf16 %v1725_v36  ;;  %v1726_v53 = vunpack.i.l.bf16 %v1725_v36 }
 0x6e2   : > { %1380 = vmatpush.bf16.msrb.mxu2 %v1351_v62  ;;  %v1717_v51 = vunpack.i.h.bf16 %v1715_v1  ;;  %v1716_v4 = vunpack.i.l.bf16 %v1715_v1 }
 0x6e3   : > { %v1346_v2 = vpack.c.bf16 %v1727_v6, %v1726_v53 }
 0x6e4   : > { %v1348_v47 = vpack.c.bf16 %v1717_v51, %v1716_v4 }
 0x6e6   : > { %1381 = vmatpush.bf16.msrb.mxu2 %v1350_v63 }
 0x6e8   : > { %v1364_v18 = vpop.permute.xlu0 %1363 }
 0x6e9   : > { %v1730_v7 = vpop.permute.xlu1 %1729 }
 0x6ea   : > { %1382 = vmatpush.bf16.msrb.mxu2 %v1349_v25  ;;  %v1732_v0 = vunpack.i.h.bf16 %v1730_v7  ;;  %v1731_v56 = vunpack.i.l.bf16 %v1730_v7 }
 0x6ec   : > { %v1345_v12 = vpack.c.bf16 %v1732_v0, %v1731_v56 }
 0x6ee   : > { %1383 = vmatpush.bf16.msrb.mxu2 %v1348_v47 }
 0x6f1   : > { %v1359_v16 = vpop.permute.xlu1 %1358 }
 0x6f2   : > { %1384 = vmatpush.bf16.msrb.mxu2 %v1347_v35 }
 0x6f6   : > { %1385 = vmatpush.bf16.msrb.mxu2 %v1346_v2 }
 0x6fa   : > { %1386 = vmatpush.bf16.msrb.mxu2 %v1345_v12 }
 0x6fd   : > { %1387 = vmatmul.bf16.vlgmr.msrb.gmra.mxu2 %v1566_v13 }
 0x75b   : > { %v1402_v14 = vpop.f32.mrf.mxu3 }
 0x763   : > { %v1404_v23 = vpop.f32.mrf.mxu3 }
 0x780   : > { %v1388_v15 = vpop.f32.mrf.mxu2 }
 0x781   : > { %v1389_v17 = vadd.f32 %v1388_v15, %v1359_v16 }
 0x783   : > { %v1403_v20 = vadd.f32 %v1402_v14, %v1389_v17 }
 0x785   : > { %v1407_v26 = vmax.f32 %v1403_v20, 0.0 }
 0x787   : > { %v1409_v27 = vmul.f32 %v2272_v42, %v1407_v26 }
 0x788   : > { %v1390_v19 = vpop.f32.mrf.mxu2 }
 0x789   : > { %v1391_v22 = vadd.f32 %v1390_v19, %v1364_v18 }
 0x78b   : > { %v1405_v24 = vadd.f32 %v1404_v23, %v1391_v22 }
 0x78d   : > { %v1408_v48 = vmax.f32 %v1405_v24, 0.0 }
 0x78f   : > { %v1410_v5 = vmul.f32 %v2272_v42, %v1408_v48 }
 0x791   : > { %1429 = vmatpush.msrb.mxu1 %v1410_v5 }
 0x793   : > { %1430 = vmatpush.msrb.mxu1 %v1409_v27 }
 0x794   : > { %1572 = vmatmul.msk.f32.vlgmr.msrb.gmra.mxu1 %vm1375_vm5, %v1411_v28 }
 0x811   : > { %v1432_v8 = vpop.f32.mrf.mxu1 }
 0x812   : > { %1435 = vadd.xlane.f32.xlu2 %v1432_v8 }
 0x885   : > { %v1436_v9 = vpop.xlane.xlu2 %1435 }
 0x886   : > { %v1437_v10 = vmul.f32 0.015625, %v1436_v9 }
 0x888   : > { %v1439_v42 = vadd.f32 %v1438_v29, %v1437_v10 }
 0x88a   : > { %1441 = vst.msk [vmem:[%s570_s19] sm:$0xf] %vm1440_vm6, %v1439_v42  ;;  %v1442_v32 = vmul.f32 1.442695, %v1439_v42 }
 0x88c   : > { %1745 = vpow2.f32 %v1442_v32 }
 0x892   : > { %v1746_v31 = vpop.eup %1745 }
 0x893   : > { %1445 = vst.msk [vmem:[%s574_s29 - $0x4] sm:$0xf0] %vm1444_vm7, %v1746_v31 }
 0x894 PF: > { %s29_s24 = sadd.s32 1, %s1787_s24  }
 0x895   : > { %p26_p7 = scmp.ge.s32.totalorder %s29_s24, 4  }
 0x897   :  { %28 = sbr.rel (!%p26_p7) target bundleno = 4 (0x4), region = 140 }
 0x89c   :  { %1479 = vsyncpa [#allocation3], 1 }
 0x89d   :  { %1481 = vsyncpa [#allocation3 + $0x1], 1 }

</bundles_post_ra>
